<compile_context>
chip_gen: v5e
topology: v5e:2x2
jax: 0.10.0
libtpu: 0.0.40
codegen_flags: <defaults>
</compile_context>

<pallas_src>
import functools

import jax
import jax.numpy as jnp
from jax.experimental import pallas as pl
from jax.experimental.pallas import tpu as pltpu


def _vision_obj_kernel(
    feat_ref,   # (tm, d_obj)      row tile of region features
    box_ref,    # (tm, 4)          row tile of region boxes
    wf_ref,     # (d_obj, d_model) feature projection weight
    wb_ref,     # (4, d_model)     box projection weight
    vec_ref,    # (8, d_model)     rows: bf, bb, gamma_f, beta_f, gamma_b, beta_b, 0, 0
    out_ref,    # (tm, d_model)
    *,
    matmul_dtype,
    approximate_gelu,
):
    vecs = vec_ref[...].astype(jnp.float32)
    bf, bb = vecs[0:1, :], vecs[1:2, :]
    gamma_f, beta_f = vecs[2:3, :], vecs[3:4, :]
    gamma_b, beta_b = vecs[4:5, :], vecs[5:6, :]

    # --- Feature projection: MXU matmul, f32 accumulation.  astype is a no-op
    # when the wrapper/upstream already supplies matmul_dtype (bf16 streaming).
    feats = feat_ref[...].astype(matmul_dtype)
    wf = wf_ref[...].astype(matmul_dtype)
    rf = jnp.dot(feats, wf, preferred_element_type=jnp.float32) + bf

    # --- Box projection: K=4, keep it off the MXU.  Four broadcast FMAs on the
    # VPU are essentially free next to the LayerNorm math.
    boxes = box_ref[...].astype(jnp.float32)
    wb = wb_ref[...].astype(jnp.float32)
    rb = bb + boxes[:, 0:1] * wb[0:1, :]
    rb = rb + boxes[:, 1:2] * wb[1:2, :]
    rb = rb + boxes[:, 2:3] * wb[2:3, :]
    rb = rb + boxes[:, 3:4] * wb[3:4, :]

    # --- Single-pass LayerNorm statistics (one VALU sweep per LN).
    def layer_norm(x, gamma, beta, eps=1e-5):
        inv_d = 1.0 / x.shape[-1]
        mu = jnp.sum(x, axis=-1, keepdims=True) * inv_d
        ex2 = jnp.sum(x * x, axis=-1, keepdims=True) * inv_d
        var = jnp.maximum(ex2 - mu * mu, 0.0)
        return (x - mu) * (jax.lax.rsqrt(var + eps) * gamma) + beta

    y = layer_norm(rf, gamma_f, beta_f) + layer_norm(rb, gamma_b, beta_b)

    if approximate_gelu:
        # tanh GELU -> EUP slot (useful on v5e); NOT bit-parity with torch
        # default nn.GELU().
        c = jnp.float32(0.7978845608028654)
        y = 0.5 * y * (1.0 + jnp.tanh(c * (y + 0.044715 * (y * y * y))))
    else:
        # Exact GELU (matches torch.nn.GELU default: erf formulation).
        y = 0.5 * y * (1.0 + jax.lax.erf(y * jnp.float32(0.7071067811865476)))

    # TODO(synk): nn.Dropout(0.1) is identity at inference; no RNG mask emitted.
    out_ref[...] = y.astype(out_ref.dtype)


def _round_up(x, m):
    return ((x + m - 1) // m) * m


def _pick_row_tile(m_rows, requested, min_steps):
    """Largest tile <= requested that still yields >= min_steps grid steps
    (so pipelining and the v7x 2-TC grid split engage), rounded to a multiple
    of 16 rows (safe sublane multiple for f32 and bf16 blocks)."""
    requested = max(16, _round_up(requested, 16))
    shrunk = _round_up(pl.cdiv(m_rows, min_steps), 16)
    return max(16, min(requested, shrunk))


def _default_vmem_limit_bytes():
    """Generation-aware scoped-VMEM request: ~3/4 of physical per-core VMEM,
    capped at 64 MiB (128 MiB on v5e/v6e -> 64 MiB; 64 MiB on v7x -> 48 MiB).
    Returns None (use the compiler default) if the query is unavailable."""
    try:
        cap = int(pltpu.get_tpu_info().vmem_capacity_bytes)
    except Exception:
        return None
    return min(64 * 1024 * 1024, (cap * 3) // 4)


def vision_obj_embedding(
    region_features,           # (B, N, d_obj)
    region_boxes,              # (B, N, 4)
    params,                    # dict of weights (see init_params)
    *,
    row_tile=512,              # upper bound on rows per grid step
    min_grid_steps=4,          # keep >= this many grid steps when possible
    matmul_dtype=jnp.float32,  # jnp.bfloat16 on v6e/v7x if tolerance allows;
                               # for the full bandwidth win also pass
                               # region_features already in bf16 upstream.
    out_dtype=None,            # e.g. jnp.bfloat16 if downstream allows
    approximate_gelu=False,    # tanh GELU (v5e option; not exact torch parity)
    vmem_limit_bytes=None,     # None -> generation-aware default
):
    B, N, d_obj = region_features.shape
    d_model = params["wf"].shape[1]
    if out_dtype is None:
        out_dtype = region_features.dtype

    M = B * N
    tile = _pick_row_tile(M, row_tile, min_grid_steps)
    n_rows = pl.cdiv(M, tile)

    # Row-major views; no pad, no copy.  The trailing grid block is partial and
    # Pallas masks its out-of-bounds rows on store.
    feats2d = region_features.reshape(M, d_obj)
    boxes2d = region_boxes.reshape(M, 4)

    # Cast the feature-projection weight in the wrapper so its HBM->VMEM DMA
    # carries matmul_dtype (one-time, tiny) instead of a per-step in-kernel cast.
    wf = params["wf"].astype(matmul_dtype)

    # Pack the six (1, d_model) vectors into one sublane-tile-sized block:
    # one DMA descriptor / one VMEM buffer instead of six.
    vec = jnp.concatenate(
        [params["bf"], params["bb"], params["gamma_f"], params["beta_f"],
         params["gamma_b"], params["beta_b"],
         jnp.zeros((2, d_model), jnp.float32)],
        axis=0,
    ).astype(jnp.float32)

    kernel = functools.partial(
        _vision_obj_kernel,
        matmul_dtype=matmul_dtype,
        approximate_gelu=approximate_gelu,
    )
    row_map = lambda i: (i, 0)
    const_map = lambda i: (0, 0)

    if vmem_limit_bytes is None:
        vmem_limit_bytes = _default_vmem_limit_bytes()
    cp_kwargs = dict(dimension_semantics=("parallel",))
    if vmem_limit_bytes is not None:
        cp_kwargs["vmem_limit_bytes"] = int(vmem_limit_bytes)

    # Advisory cost estimate so XLA schedules surrounding ops sensibly.
    in_bytes = (
        M * d_obj * jnp.dtype(feats2d.dtype).itemsize
        + M * 4 * jnp.dtype(boxes2d.dtype).itemsize
        + wf.size * jnp.dtype(wf.dtype).itemsize
        + params["wb"].size * 4
        + vec.size * 4
    )
    out_bytes = M * d_model * jnp.dtype(out_dtype).itemsize
    cost = pl.CostEstimate(
        flops=2 * M * d_model * (d_obj + 4) + 14 * M * d_model,
        transcendentals=M * d_model + 4 * M,     # erf/tanh per element, rsqrt per row per LN
        bytes_accessed=in_bytes + out_bytes,
    )

    out2d = pl.pallas_call(
        kernel,
        out_shape=jax.ShapeDtypeStruct((M, d_model), out_dtype),
        grid_spec=pltpu.PrefetchScalarGridSpec(
            num_scalar_prefetch=0,
            grid=(n_rows,),
            in_specs=[
                pl.BlockSpec((tile, d_obj), row_map),      # features (streamed)
                pl.BlockSpec((tile, 4), row_map),          # boxes    (streamed)
                pl.BlockSpec((d_obj, d_model), const_map),  # Wf (grid-invariant)
                pl.BlockSpec((4, d_model), const_map),      # Wb (grid-invariant)
                pl.BlockSpec((8, d_model), const_map),      # packed bias/LN vecs
            ],
            out_specs=pl.BlockSpec((tile, d_model), row_map),
        ),
        compiler_params=pltpu.CompilerParams(**cp_kwargs),
        cost_estimate=cost,
    )(feats2d, boxes2d, wf, params["wb"], vec)

    return out2d.reshape(B, N, d_model)


def init_params(key, d_obj, d_model):
    """PyTorch-like Linear init; LayerNorm affines perturbed from the defaults
    so the test actually exercises gamma/beta."""
    kf, kfb, kb, kbb, kg1, kb1, kg2, kb2 = jax.random.split(key, 8)
    bound_f = 1.0 / jnp.sqrt(d_obj)
    bound_b = 1.0 / jnp.sqrt(4.0)
    return {
        # Stored as (in, out) so the kernel does x @ W directly (== x @ W_torch.T).
        "wf": jax.random.uniform(kf, (d_obj, d_model), jnp.float32, -bound_f, bound_f),
        "bf": jax.random.uniform(kfb, (1, d_model), jnp.float32, -bound_f, bound_f),
        "wb": jax.random.uniform(kb, (4, d_model), jnp.float32, -bound_b, bound_b),
        "bb": jax.random.uniform(kbb, (1, d_model), jnp.float32, -bound_b, bound_b),
        "gamma_f": 1.0 + 0.1 * jax.random.normal(kg1, (1, d_model), jnp.float32),
        "beta_f": 0.1 * jax.random.normal(kb1, (1, d_model), jnp.float32),
        "gamma_b": 1.0 + 0.1 * jax.random.normal(kg2, (1, d_model), jnp.float32),
        "beta_b": 0.1 * jax.random.normal(kb2, (1, d_model), jnp.float32),
    }


def _reference(region_features, region_boxes, p):
    rf = region_features @ p["wf"] + p["bf"]
    # Box projection as explicit f32 FMAs (same math as the kernel's VPU path;
    # avoids TPU default-matmul-precision ambiguity for this tiny K=4 contraction).
    rb = (region_boxes[..., None] * p["wb"]).sum(axis=-2) + p["bb"]

    def ln(x, g, b, eps=1e-5):
        mu = jnp.mean(x, axis=-1, keepdims=True)
        var = jnp.mean((x - mu) ** 2, axis=-1, keepdims=True)
        return (x - mu) / jnp.sqrt(var + eps) * g + b

    y = ln(rf, p["gamma_f"], p["beta_f"]) + ln(rb, p["gamma_b"], p["beta_b"])
    return jax.nn.gelu(y, approximate=False)


if __name__ == "__main__":
    # Small shapes consistent with the module: batch=2, 100 regions per image,
    # d_obj=256 region-feature dim, d_model=128 (multiple of 128 -> lane-dense
    # output stores).  B*N=200: the auto-picked row tile (64) gives a 4-step
    # grid with a PARTIAL trailing block, exercising the masked-store path.
    B, N, d_obj, d_model = 2, 100, 256, 128

    key = jax.random.PRNGKey(0)
    k_params, k_feat, k_box = jax.random.split(key, 3)

    params = init_params(k_params, d_obj, d_model)
    region_features = jax.random.normal(k_feat, (B, N, d_obj), jnp.float32)
    region_boxes = jax.random.uniform(k_box, (B, N, 4), jnp.float32)

    # f32 path: exact parity with the PyTorch module (erf GELU, f32 matmul).
    out = vision_obj_embedding(region_features, region_boxes, params)
    out = jax.block_until_ready(out)
    ref = _reference(region_features, region_boxes, params)
    assert out.shape == (B, N, d_model)
    max_err = float(jnp.max(jnp.abs(out - ref)))
    assert jnp.allclose(out, ref, atol=1e-4, rtol=1e-4), (
        f"f32 mismatch vs reference (max abs err {max_err})"
    )

    # bf16 streaming path (v6e/v7x): features supplied in bf16 upstream, bf16
    # weight DMA, f32 accumulation, bf16 output.  Looser tolerance by design.
    out_bf16 = vision_obj_embedding(
        region_features.astype(jnp.bfloat16), region_boxes, params,
        matmul_dtype=jnp.bfloat16, out_dtype=jnp.bfloat16,
    )
    out_bf16 = jax.block_until_ready(out_bf16)
    max_err_bf16 = float(jnp.max(jnp.abs(out_bf16.astype(jnp.float32) - ref)))
    assert max_err_bf16 < 1e-1, (
        f"bf16 streaming mismatch vs reference (max abs err {max_err_bf16})"
    )

    print("KERNEL_OK")
</pallas_src>

<mosaic_0001>
module attributes {stable_mosaic.version = 11 : i64} {
  func.func @_vision_obj_kernel(%arg0: i32, %arg1: memref<64x256xf32, #tpu.memory_space<vmem>>, %arg2: memref<64x4xf32, #tpu.memory_space<vmem>>, %arg3: memref<256x128xf32, #tpu.memory_space<vmem>>, %arg4: memref<4x128xf32, #tpu.memory_space<vmem>>, %arg5: memref<8x128xf32, #tpu.memory_space<vmem>>, %arg6: memref<64x128xf32, #tpu.memory_space<vmem>>) attributes {dimension_semantics = [#tpu.dimension_semantics<parallel>], iteration_bounds = array<i64: 4>, scalar_prefetch = 0 : i64, scratch_operands = 0 : i64, tpu.core_type = #tpu.core_type<tc>, window_params = [{transform_indices = @transform_0, window_bounds = array<i64: 64, 256>}, {transform_indices = @transform_1, window_bounds = array<i64: 64, 4>}, {pipeline_mode = #tpu.pipeline_mode<synchronous>, transform_indices = @transform_2, window_bounds = array<i64: 256, 128>}, {pipeline_mode = #tpu.pipeline_mode<synchronous>, transform_indices = @transform_3, window_bounds = array<i64: 4, 128>}, {pipeline_mode = #tpu.pipeline_mode<synchronous>, transform_indices = @transform_4, window_bounds = array<i64: 8, 128>}, {transform_indices = @transform_5, window_bounds = array<i64: 64, 128>}]} {
    %c0 = arith.constant 0 : index
    %c0_0 = arith.constant 0 : index
    %0 = vector.load %arg5[%c0, %c0_0] : memref<8x128xf32, #tpu.memory_space<vmem>>, vector<8x128xf32>
    %1 = vector.extract_strided_slice %0 {offsets = [0, 0], sizes = [1, 128], strides = [1, 1]} : vector<8x128xf32> to vector<1x128xf32>
    %2 = vector.extract_strided_slice %0 {offsets = [1, 0], sizes = [1, 128], strides = [1, 1]} : vector<8x128xf32> to vector<1x128xf32>
    %3 = vector.extract_strided_slice %0 {offsets = [2, 0], sizes = [1, 128], strides = [1, 1]} : vector<8x128xf32> to vector<1x128xf32>
    %4 = vector.extract_strided_slice %0 {offsets = [3, 0], sizes = [1, 128], strides = [1, 1]} : vector<8x128xf32> to vector<1x128xf32>
    %5 = vector.extract_strided_slice %0 {offsets = [4, 0], sizes = [1, 128], strides = [1, 1]} : vector<8x128xf32> to vector<1x128xf32>
    %6 = vector.extract_strided_slice %0 {offsets = [5, 0], sizes = [1, 128], strides = [1, 1]} : vector<8x128xf32> to vector<1x128xf32>
    %c0_1 = arith.constant 0 : index
    %c0_2 = arith.constant 0 : index
    %7 = vector.load %arg1[%c0_1, %c0_2] : memref<64x256xf32, #tpu.memory_space<vmem>>, vector<64x256xf32>
    %c0_3 = arith.constant 0 : index
    %c0_4 = arith.constant 0 : index
    %8 = vector.load %arg3[%c0_3, %c0_4] : memref<256x128xf32, #tpu.memory_space<vmem>>, vector<256x128xf32>
    %cst = arith.constant dense<0.000000e+00> : vector<64x128xf32>
    %9 = tpu.matmul %7, %8, %cst {dimension_numbers = #tpu.dot_dimension_numbers<[1], [0], [0], [1], [0, 0, 1, 1], [], []>} : vector<64x256xf32>, vector<256x128xf32>, vector<64x128xf32> -> vector<64x128xf32>
    %10 = vector.broadcast %1 : vector<1x128xf32> to vector<64x128xf32>
    %11 = arith.addf %9, %10 : vector<64x128xf32>
    %c0_5 = arith.constant 0 : index
    %c0_6 = arith.constant 0 : index
    %12 = vector.load %arg2[%c0_5, %c0_6] : memref<64x4xf32, #tpu.memory_space<vmem>>, vector<64x4xf32>
    %c0_7 = arith.constant 0 : index
    %c0_8 = arith.constant 0 : index
    %13 = vector.load %arg4[%c0_7, %c0_8] : memref<4x128xf32, #tpu.memory_space<vmem>>, vector<4x128xf32>
    %14 = vector.extract_strided_slice %12 {offsets = [0, 0], sizes = [64, 1], strides = [1, 1]} : vector<64x4xf32> to vector<64x1xf32>
    %15 = vector.extract_strided_slice %13 {offsets = [0, 0], sizes = [1, 128], strides = [1, 1]} : vector<4x128xf32> to vector<1x128xf32>
    %16 = vector.broadcast %14 : vector<64x1xf32> to vector<64x128xf32>
    %17 = vector.broadcast %15 : vector<1x128xf32> to vector<64x128xf32>
    %18 = arith.mulf %16, %17 : vector<64x128xf32>
    %19 = vector.broadcast %2 : vector<1x128xf32> to vector<64x128xf32>
    %20 = arith.addf %19, %18 : vector<64x128xf32>
    %21 = vector.extract_strided_slice %12 {offsets = [0, 1], sizes = [64, 1], strides = [1, 1]} : vector<64x4xf32> to vector<64x1xf32>
    %22 = vector.extract_strided_slice %13 {offsets = [1, 0], sizes = [1, 128], strides = [1, 1]} : vector<4x128xf32> to vector<1x128xf32>
    %23 = vector.broadcast %21 : vector<64x1xf32> to vector<64x128xf32>
    %24 = vector.broadcast %22 : vector<1x128xf32> to vector<64x128xf32>
    %25 = arith.mulf %23, %24 : vector<64x128xf32>
    %26 = arith.addf %20, %25 : vector<64x128xf32>
    %27 = vector.extract_strided_slice %12 {offsets = [0, 2], sizes = [64, 1], strides = [1, 1]} : vector<64x4xf32> to vector<64x1xf32>
    %28 = vector.extract_strided_slice %13 {offsets = [2, 0], sizes = [1, 128], strides = [1, 1]} : vector<4x128xf32> to vector<1x128xf32>
    %29 = vector.broadcast %27 : vector<64x1xf32> to vector<64x128xf32>
    %30 = vector.broadcast %28 : vector<1x128xf32> to vector<64x128xf32>
    %31 = arith.mulf %29, %30 : vector<64x128xf32>
    %32 = arith.addf %26, %31 : vector<64x128xf32>
    %33 = vector.extract_strided_slice %12 {offsets = [0, 3], sizes = [64, 1], strides = [1, 1]} : vector<64x4xf32> to vector<64x1xf32>
    %34 = vector.extract_strided_slice %13 {offsets = [3, 0], sizes = [1, 128], strides = [1, 1]} : vector<4x128xf32> to vector<1x128xf32>
    %35 = vector.broadcast %33 : vector<64x1xf32> to vector<64x128xf32>
    %36 = vector.broadcast %34 : vector<1x128xf32> to vector<64x128xf32>
    %37 = arith.mulf %35, %36 : vector<64x128xf32>
    %38 = arith.addf %32, %37 : vector<64x128xf32>
    %cst_9 = arith.constant dense<0.000000e+00> : vector<64xf32>
    %39 = vector.multi_reduction <add>, %11, %cst_9 [1] : vector<64x128xf32> to vector<64xf32>
    %40 = vector.shape_cast %39 : vector<64xf32> to vector<64x1xf32>
    %cst_10 = arith.constant 7.812500e-03 : f32
    %41 = vector.broadcast %cst_10 : f32 to vector<64x1xf32>
    %42 = arith.mulf %40, %41 : vector<64x1xf32>
    %43 = arith.mulf %11, %11 : vector<64x128xf32>
    %cst_11 = arith.constant dense<0.000000e+00> : vector<64xf32>
    %44 = vector.multi_reduction <add>, %43, %cst_11 [1] : vector<64x128xf32> to vector<64xf32>
    %45 = vector.shape_cast %44 : vector<64xf32> to vector<64x1xf32>
    %cst_12 = arith.constant 7.812500e-03 : f32
    %46 = vector.broadcast %cst_12 : f32 to vector<64x1xf32>
    %47 = arith.mulf %45, %46 : vector<64x1xf32>
    %48 = arith.mulf %42, %42 : vector<64x1xf32>
    %49 = arith.subf %47, %48 : vector<64x1xf32>
    %cst_13 = arith.constant 0.000000e+00 : f32
    %50 = vector.broadcast %cst_13 : f32 to vector<64x1xf32>
    %51 = arith.maximumf %49, %50 : vector<64x1xf32>
    %52 = vector.broadcast %42 : vector<64x1xf32> to vector<64x128xf32>
    %53 = arith.subf %11, %52 : vector<64x128xf32>
    %cst_14 = arith.constant 9.99999974E-6 : f32
    %54 = vector.broadcast %cst_14 : f32 to vector<64x1xf32>
    %55 = arith.addf %51, %54 : vector<64x1xf32>
    %56 = math.rsqrt %55 : vector<64x1xf32>
    %57 = vector.broadcast %56 : vector<64x1xf32> to vector<64x128xf32>
    %58 = vector.broadcast %3 : vector<1x128xf32> to vector<64x128xf32>
    %59 = arith.mulf %57, %58 : vector<64x128xf32>
    %60 = arith.mulf %53, %59 : vector<64x128xf32>
    %61 = vector.broadcast %4 : vector<1x128xf32> to vector<64x128xf32>
    %62 = arith.addf %60, %61 : vector<64x128xf32>
    %cst_15 = arith.constant dense<0.000000e+00> : vector<64xf32>
    %63 = vector.multi_reduction <add>, %38, %cst_15 [1] : vector<64x128xf32> to vector<64xf32>
    %64 = vector.shape_cast %63 : vector<64xf32> to vector<64x1xf32>
    %cst_16 = arith.constant 7.812500e-03 : f32
    %65 = vector.broadcast %cst_16 : f32 to vector<64x1xf32>
    %66 = arith.mulf %64, %65 : vector<64x1xf32>
    %67 = arith.mulf %38, %38 : vector<64x128xf32>
    %cst_17 = arith.constant dense<0.000000e+00> : vector<64xf32>
    %68 = vector.multi_reduction <add>, %67, %cst_17 [1] : vector<64x128xf32> to vector<64xf32>
    %69 = vector.shape_cast %68 : vector<64xf32> to vector<64x1xf32>
    %cst_18 = arith.constant 7.812500e-03 : f32
    %70 = vector.broadcast %cst_18 : f32 to vector<64x1xf32>
    %71 = arith.mulf %69, %70 : vector<64x1xf32>
    %72 = arith.mulf %66, %66 : vector<64x1xf32>
    %73 = arith.subf %71, %72 : vector<64x1xf32>
    %cst_19 = arith.constant 0.000000e+00 : f32
    %74 = vector.broadcast %cst_19 : f32 to vector<64x1xf32>
    %75 = arith.maximumf %73, %74 : vector<64x1xf32>
    %76 = vector.broadcast %66 : vector<64x1xf32> to vector<64x128xf32>
    %77 = arith.subf %38, %76 : vector<64x128xf32>
    %cst_20 = arith.constant 9.99999974E-6 : f32
    %78 = vector.broadcast %cst_20 : f32 to vector<64x1xf32>
    %79 = arith.addf %75, %78 : vector<64x1xf32>
    %80 = math.rsqrt %79 : vector<64x1xf32>
    %81 = vector.broadcast %80 : vector<64x1xf32> to vector<64x128xf32>
    %82 = vector.broadcast %5 : vector<1x128xf32> to vector<64x128xf32>
    %83 = arith.mulf %81, %82 : vector<64x128xf32>
    %84 = arith.mulf %77, %83 : vector<64x128xf32>
    %85 = vector.broadcast %6 : vector<1x128xf32> to vector<64x128xf32>
    %86 = arith.addf %84, %85 : vector<64x128xf32>
    %87 = arith.addf %62, %86 : vector<64x128xf32>
    %cst_21 = arith.constant 5.000000e-01 : f32
    %88 = vector.broadcast %cst_21 : f32 to vector<64x128xf32>
    %89 = arith.mulf %88, %87 : vector<64x128xf32>
    %cst_22 = arith.constant 0.707106769 : f32
    %90 = vector.broadcast %cst_22 : f32 to vector<64x128xf32>
    %91 = arith.mulf %87, %90 : vector<64x128xf32>
    %92 = math.erf %91 : vector<64x128xf32>
    %cst_23 = arith.constant 1.000000e+00 : f32
    %93 = vector.broadcast %cst_23 : f32 to vector<64x128xf32>
    %94 = arith.addf %93, %92 : vector<64x128xf32>
    %95 = arith.mulf %89, %94 : vector<64x128xf32>
    %c0_24 = arith.constant 0 : index
    %c0_25 = arith.constant 0 : index
    %96 = vector.load %arg6[%c0_24, %c0_25] : memref<64x128xf32, #tpu.memory_space<vmem>>, vector<64x128xf32>
    tpu.vector_store %arg6[%c0_24, %c0_25], %95 {strides = array<i32>} : memref<64x128xf32, #tpu.memory_space<vmem>>, vector<64x128xf32>,
    return
  }
  func.func @transform_0(%arg0: i32) -> (i32, i32) {
    %c0_i32 = arith.constant 0 : i32
    %c0_i32_0 = arith.constant 0 : i32
    return %arg0, %c0_i32 : i32, i32
  }
  func.func @transform_1(%arg0: i32) -> (i32, i32) {
    %c0_i32 = arith.constant 0 : i32
    %c0_i32_0 = arith.constant 0 : i32
    return %arg0, %c0_i32 : i32, i32
  }
  func.func @transform_2(%arg0: i32) -> (i32, i32) {
    %c0_i32 = arith.constant 0 : i32
    %c0_i32_0 = arith.constant 0 : i32
    %c0_i32_1 = arith.constant 0 : i32
    return %c0_i32, %c0_i32_0 : i32, i32
  }
  func.func @transform_3(%arg0: i32) -> (i32, i32) {
    %c0_i32 = arith.constant 0 : i32
    %c0_i32_0 = arith.constant 0 : i32
    %c0_i32_1 = arith.constant 0 : i32
    return %c0_i32, %c0_i32_0 : i32, i32
  }
  func.func @transform_4(%arg0: i32) -> (i32, i32) {
    %c0_i32 = arith.constant 0 : i32
    %c0_i32_0 = arith.constant 0 : i32
    %c0_i32_1 = arith.constant 0 : i32
    return %c0_i32, %c0_i32_0 : i32, i32
  }
  func.func @transform_5(%arg0: i32) -> (i32, i32) {
    %c0_i32 = arith.constant 0 : i32
    %c0_i32_0 = arith.constant 0 : i32
    return %arg0, %c0_i32 : i32, i32
  }
}

</mosaic_0001>

<bundles_post_ra>
// kernel: tpu_custom_call.1
= control target key start
LH: loop header
LB: loop body
LE: loop exit
PB: predicated region body
PF: predicated region fallthrough
CT: control target
= control target key end

     0   :  { %s3051_s0 = inlined_call_operand.hbm [shape: f32[200,256], index: 0, kind: input, shape index: {}]   ;;  %s3052_s1 = inlined_call_operand.vmem [shape: f32[200,4], index: 1, kind: input, shape index: {}]   ;;  %s3053_s2 = inlined_call_operand.hbm [shape: f32[256,128], index: 2, kind: input, shape index: {}]   ;;  %s3054_s3 = inlined_call_operand.vmem [shape: f32[4,128], index: 3, kind: input, shape index: {}]   ;;  %s3055_s4 = inlined_call_operand.vmem [shape: f32[8,128], index: 4, kind: input, shape index: {}]   ;;  %s3056_s5 = inlined_call_operand.hbm [shape: f32[200,128], index: 5, kind: output, shape index: {}]  }
   0x1   :  { %3063 = sst [smem:[#allocation15_spill]] %s3053_s2 }
   0x2   :  { %10 = vsyncpa [#allocation3], 0 }
   0x3   :  { %12 = vsyncpa [#allocation3 + $0x1], 0 }
   0x4   :  { %13 = vsyncpa [#allocation6], 0 }
   0x5   :  { %14 = vsyncpa [#allocation4], 0 }
   0x6   :  { %16 = vsyncpa [#allocation4 + $0x1], 0  ;;  %s1947_s18 = smov 0   ;;  %s1949_s19 = smov 0  }
   0x7   :  { %s1951_s20 = smov 0   ;;  %s1953_s21 = smov 0  }
   0x8 LB: > { %s1968_s22 = sadd.s32 4294967295, %s1902_s21   ;;  %s1560_s23 = sadd.s32 4294967294, %s1902_s21   ;;  %s1902_s21 = sphi %s1953_s21, %s3107_s21   ;;  %s1898_s20 = sphi %s1951_s20, %s3106_s20   ;;  %s1894_s19 = sphi %s1949_s19, %s3105_s19   ;;  %s1890_s18 = sphi %s1947_s18, %s3104_s18  }
   0x9   : > { %s1972_s24 = sadd.s32 1, %s1902_s21   ;;  %s29_s25 = sadd.s32 1, %s1898_s20 }
   0xa   : > { %s26_s26 = ssub.s32 %s1902_s21, %s1972_s24  ;;  %p36_p0 = scmp.ne.s32.totalorder %s1898_s20, %s1894_s19 }
   0xb   : > { %p27_p1 = scmp.eq.s32.totalorder %s26_s26, 0  ;;  %p37_p2 = scmp.eq.s32.totalorder %s1902_s21, 0 }
   0xc   : > { %p42_p3 = scmp.ne.s32.totalorder %s1894_s19, %s1890_s18  ;;  %p3058_p4 = scmp.eq.s32.totalorder %s1968_s22, 0 }
   0xd   : > { %s1984_s27 = scalar_select %p27_p1, %s1898_s20, %s29_s25  }
   0xe   : > { %p1986_p5 = por %p37_p2, %p36_p0  ;;  %p1992_p6 = por %p3058_p4, %p42_p3 }
   0xf   : > { %p155_p7 = scmp.eq.s32.totalorder %s1968_s22, 3  ;;  %p161_p8 = scmp.eq.s32.totalorder %s1560_s23, 3 }
  0x10   : > { %p1561_p9 = scmp.ge.s32.totalorder %s1902_s21, 1  ;;  %p168_p10 = scmp.lt.s32.totalorder %s1902_s21, 5 }
  0x11   : > { %p1999_p11 = por %p155_p7, %p36_p0  ;;  %p2003_p12 = por %p161_p8, %p42_p3 }
  0x12   : > { %p2007_p13 = pnand %p1561_p9, %p168_p10  ;;  %s3069_s2 = sld [smem:[#allocation15_spill]] }
  0x13   : > { %s3067_s6 = scalar_select %p2003_p12, 1, 0 }
  0x14   : > { %p1638_p1 = pneg %p2007_p13  ;;  %s1904_s11 = smov [#allocation5]  }
  0x15   : > { %s181_s12 = sshll.u32 %s1904_s11, 4  ;;  %s1905_s13 = smov 128   ;;  %s182_s12 = int_to_ptr.vmem [resolvable:$true] %s181_s12 }
  0x16   : > { %p1639_p0 = pnand %p1638_p1, %p3058_p4  ;;  %s1906_s14 = smov 8  }
  0x17   : > { %p1563_p2 = scmp.ge.s32.totalorder %s1902_s21, 4 }
  0x18   : > { %s179_s10 = sshll.u32 %s3069_s2, 4  ;;  %s180_s10 = int_to_ptr.hbm [resolvable:$true] %s179_s10 }
  0x19   : > { %1641 = dma.hbm_to_vmem [thread:$0]  (!%p1639_p0), %s180_s10, 4096, %s182_s12, [#allocation6], %s1905_s13, %s1905_s13, %s1906_s14  }
  0x1a   : > { %197 = sbr.rel (%p1563_p2) target bundleno = 68 (0x44), region = 28 }
  0x1f   : > { %200 = sbr.rel (!%p1986_p5) target bundleno = 68 (0x44), region = 32  ;;  %s201_s15 = sand.u32 (%p1986_p5), 1, %s1898_s20  }
  0x20   : > { %s1565_s16 = sshll.u32 (%p1986_p5), %s1902_s21, 3  ;;  %s1564_s17 = sshll.u32 (%p1986_p5), %s201_s15, 7 }
  0x21   : > { %s207_s23 = ssub.s32 (%p1986_p5), 25, %s1565_s16  ;;  %s2026_s9 = scalar_lea.sflag (%p1986_p5), [#allocation3], %s201_s15 }
  0x22   : > { %p208_p3 = scmp.lt.s32.totalorder (%p1986_p5), %s207_s23, 8  ;;  %s205_s10 = scalar_lea.vmem (%p1986_p5), [#allocation2], %s1564_s17 }
  0x24   : > { %s3109_s23 = smov (!%p208_p3, %s207_s23), 8 }
  0x25   : > { %s1596_s25 = sshll.u32 %s3109_s23, 4 }
  0x26   : > { %s212_s26 = ssub.s32 128, %s1596_s25 }
  0x27   : > { %s213_s8 = sshll.u32 %s212_s26, 4 }
  0x28   : > { %214 = vsyncadd %s2026_s9, %s213_s8  ;;  %p2029_p5 = scmp.ne.s32.totalorder %s1596_s25, 0  ;;  %s1598_s11 = sshll.u32 %s1902_s21, 7 }
  0x29   : > { %s218_s14 = scalar_lea.hbm %s3051_s0, %s1598_s11  ;;  %s2037_s16 = sshll.u32 %s205_s10, 4  ;;  %s223_s16 = int_to_ptr.vmem [resolvable:$true] %s2037_s16 }
  0x2a   : > { %s220_s15 = sshll.u32 %s218_s14, 4  ;;  %s3057_s17 = sshll.u32 %s3109_s23, 8  ;;  %s2040_s15 = int_to_ptr.hbm [resolvable:$true] %s220_s15 }
  0x2b   : > { %s1782_s26 = sshra.s32 %s2040_s15, 4  ;;  %s1784_s25 = sshrl.u32 %s3057_s17, 4  ;;  %s1783_s26 = int_to_ptr.hbm [resolvable:$true] %s1782_s26 }
  0x2c   : > { %s1789_s8 = scalar_lea.hbm %s1783_s26, %s1784_s25  ;;  %s1793_s10 = scalar_lea.hbm %s3051_s0, 400 }
  0x2d   : > { %p1790_p7 = scmp.ne.s32.totalorder %s1783_s26, %s1789_s8  ;;  %p1794_p10 = scmp.lt.s32.totalorder %s1783_s26, %s3051_s0 }
  0x2e   : > { %p1795_p1 = scmp.lt.s32.totalorder %s1793_s10, %s1789_s8 }
  0x2f   : > { %p1791_p8 = pnand %p1790_p7, %p2029_p5 }
  0x30   : > { %p1796_p0 = por %p1795_p1, %p1794_p10 }
  0x31   : > { %p1792_p9 = pneg %p1791_p8 }
  0x33   : > { %p1797_p2 = pnand %p1796_p0, %p1792_p9 }
  0x35   : > { %1800 = shalt.err (!%p1797_p2)
}
  0x36   : > { %s1801_s17 = sshra.s32 %s223_s16, 4  ;;  %s1907_s12 = smov [#allocation2]   ;;  %s1802_s17 = int_to_ptr.vmem [resolvable:$true] %s1801_s17 }
  0x37   : > { %s1808_s2 = scalar_lea.vmem %s1802_s17, %s1784_s25  ;;  %s1812_s11 = scalar_lea.vmem %s1907_s12, 256 }
  0x38   : > { %p1809_p3 = scmp.ne.s32.totalorder %s1802_s17, %s1808_s2  ;;  %p1814_p4 = scmp.lt.s32.totalorder %s1812_s11, %s1808_s2 }
  0x3a   : > { %p1810_p7 = pnand %p1809_p3, %p2029_p5 }
  0x3c   : > { %p1811_p8 = pneg %p1810_p7 }
  0x3e   : > { %p1816_p12 = pnand %p1814_p4, %p1811_p8 }
  0x40   : > { %1819 = shalt.err (!%p1816_p12)
}
  0x41   : > { %s1908_s26 = smov 256   ;;  %s1909_s8 = smov 16  }
  0x42   : > { %s3071_s10 = sshll.u32 %s3109_s23, 8 }
  0x43   : > { %228 = dma.hbm_to_vmem [thread:$0]  (%p2029_p5), %s2040_s15, %s3071_s10, %s223_s16, %s2026_s9, %s1908_s26, %s1908_s26, %s1909_s8  }
  0x44 PF: > { %251 = sbr.rel (%p2007_p13) target bundleno = 638 (0x27e), region = 40 }
  0x49   : > { %s2069_s2 = sand.u32 1, %s1894_s19  }
  0x4a   : > { %s1574_s17 = sshll.u32 %s2069_s2, 7  ;;  %s254_s25 = scalar_lea.sflag [#allocation3], %s2069_s2 }
  0x4b   : > { %s2073_s13 = scalar_lea.vmem [#allocation2], %s1574_s17 }
  0x4c   : > { %1877 = dma.done.wait (%p1992_p6), %s254_s25, 2048  }
  0x4d   : > { %1879 = vsyncadd (%p1992_p6), %s254_s25, 4294965248  ;;  %p3072_p4 = scmp.eq.s32.totalorder %s1968_s22, 0 }
  0x4f   : > { %1881 = dma.done.wait (%p3072_p4), [#allocation6], 4096   ;;  %p3073_p12 = pmov %p3072_p4 }
  0x50   : > { %s2084_s7 = sshll.u32 %s1968_s22, 3  ;;  %v1910_v0 = vmov 0   ;;  %v356_v4 = vld [vmem:[#allocation5 + $0x78] sm:$0xff]  ;;  %v355_v5 = vld [vmem:[#allocation5 + $0x70] sm:$0xff]  ;;  %v354_v7 = vld [vmem:[#allocation5 + $0x68] sm:$0xff]  ;;  %v1911_v24 = vmov 1  }
  0x51   : > { %1883 = vsyncadd (%p3073_p12), [#allocation6], 4294963200  ;;  %1694 = vset.pattern.permute.xlu2 %v1910_v0  ;;  %1693 = vset.pattern.permute.xlu1 %v1910_v0  ;;  %p310_p13 = scmp.lt.s32.totalorder %s2084_s7, 24  ;;  %v372_v6 = vld [vmem:[#allocation5 + $0xf8] sm:$0xff]  ;;  %v371_v8 = vld [vmem:[#allocation5 + $0xf0] sm:$0xff]  ;;  %v1912_v44 = vmov 2  }
  0x52   : > { %1692 = vset.pattern.permute.xlu0 %v1910_v0  ;;  %374 = vmatpush.msra.mxu0 %v356_v4  ;;  %v370_v9 = vld [vmem:[#allocation5 + $0xe8] sm:$0xff]  ;;  %v353_v13 = vld [vmem:[#allocation5 + $0x60] sm:$0xff]  ;;  %v352_v15 = vld [vmem:[#allocation5 + $0x58] sm:$0xff]  ;;  %v1913_v53 = vmov 3   ;;  %s1576_s26 = sshll.u32 %s2069_s2, 6  ;;  %s1443_s10 = scalar_lea.sflag [#allocation4], %s2069_s2 }
  0x53   : > { %s311_s23 = scalar_select %p310_p13, %s2084_s7, 24  ;;  %1600 = vmatpush.msra.mxu2 %v356_v4  ;;  %415 = vmatpush.msra.mxu1 %v372_v6  ;;  %v369_v14 = vld [vmem:[#allocation5 + $0xe0] sm:$0xff]  ;;  %v368_v16 = vld [vmem:[#allocation5 + $0xd8] sm:$0xff]  ;;  %v351_v17 = vld [vmem:[#allocation5 + $0x50] sm:$0xff] }
  0x54   : > { %1616 = vmatpush.msra.mxu3 %v372_v6  ;;  %375 = vmatpush.msra.mxu0 %v355_v5  ;;  %v367_v18 = vld [vmem:[#allocation5 + $0xd0] sm:$0xff]  ;;  %v350_v19 = vld [vmem:[#allocation5 + $0x48] sm:$0xff]  ;;  %v349_v22 = vld [vmem:[#allocation5 + $0x40] sm:$0xff]  ;;  %s2709_s8 = scalar_lea.vmem [#allocation7], %s1576_s26  ;;  %s1451_s17 = ssub.s32 (%p1999_p11), 25, %s2084_s7 }
  0x55   : > { %s1578_s9 = sshll.u32 %s311_s23, 3  ;;  %1601 = vmatpush.msra.mxu2 %v355_v5  ;;  %416 = vmatpush.msra.mxu1 %v371_v8  ;;  %v366_v23 = vld [vmem:[#allocation5 + $0xc8] sm:$0xff]  ;;  %v348_v25 = vld [vmem:[#allocation5 + $0x38] sm:$0xff]  ;;  %v365_v26 = vld [vmem:[#allocation5 + $0xc0] sm:$0xff]  ;;  %p1452_p6 = scmp.lt.s32.totalorder (%p1999_p11), %s1451_s17, 8 }
  0x56   : > { %s2091_s16 = scalar_lea.vmem %s3052_s1, %s1578_s9  ;;  %1617 = vmatpush.msra.mxu3 %v371_v8  ;;  %376 = vmatpush.msra.mxu0 %v354_v7  ;;  %v347_v27 = vld [vmem:[#allocation5 + $0x30] sm:$0xff]  ;;  %v364_v28 = vld [vmem:[#allocation5 + $0xb8] sm:$0xff]  ;;  %v346_v29 = vld [vmem:[#allocation5 + $0x28] sm:$0xff] }
  0x57   : > { %v2094_v1 = vld [vmem:[%s2091_s16 + $0x20] sm:$0xff]  ;;  %v2097_v2 = vld [vmem:[%s2091_s16 + $0x10] sm:$0xff]  ;;  %v2106_v10 = vld [vmem:[%s2091_s16 + $0x28] sm:$0xff]  ;;  %1602 = vmatpush.msra.mxu2 %v354_v7  ;;  %417 = vmatpush.msra.mxu1 %v370_v9 }
  0x58   : > { %v2100_v3 = vld [vmem:[%s2091_s16] sm:$0xff]  ;;  %487 = vperm.xlu2 %1694, %v2094_v1   ;;  %477 = vperm.xlu1 %1693, %v2097_v2   ;;  %v2109_v11 = vld [vmem:[%s2091_s16 + $0x18] sm:$0xff]  ;;  %v2112_v12 = vld [vmem:[%s2091_s16 + $0x8] sm:$0xff] }
  0x59   : > { %467 = vperm.xlu0 %1692, %v2100_v3   ;;  %1618 = vmatpush.msra.mxu3 %v370_v9  ;;  %v2118_v20 = vld [vmem:[%s2091_s16 + $0x38] sm:$0xff]  ;;  %v2121_v21 = vld [vmem:[%s2091_s16 + $0x30] sm:$0xff]  ;;  %v345_v31 = vld [vmem:[#allocation5 + $0x20] sm:$0xff] }
  0x5a   : > { %377 = vmatpush.msra.mxu0 %v353_v13  ;;  %418 = vmatpush.msra.mxu1 %v369_v14  ;;  %v363_v30 = vld [vmem:[#allocation5 + $0xb0] sm:$0xff]  ;;  %v362_v32 = vld [vmem:[#allocation5 + $0xa8] sm:$0xff]  ;;  %v344_v33 = vld [vmem:[#allocation5 + $0x18] sm:$0xff] }
  0x5b   : > { %1603 = vmatpush.msra.mxu2 %v353_v13  ;;  %1619 = vmatpush.msra.mxu3 %v369_v14  ;;  %v361_v34 = vld [vmem:[#allocation5 + $0xa0] sm:$0xff]  ;;  %v343_v35 = vld [vmem:[#allocation5 + $0x10] sm:$0xff]  ;;  %v360_v36 = vld [vmem:[#allocation5 + $0x98] sm:$0xff] }
  0x5c   : > { %378 = vmatpush.msra.mxu0 %v352_v15  ;;  %419 = vmatpush.msra.mxu1 %v368_v16  ;;  %v342_v37 = vld [vmem:[#allocation5 + $0x8] sm:$0xff]  ;;  %v359_v38 = vld [vmem:[#allocation5 + $0x90] sm:$0xff]  ;;  %v341_v39 = vld [vmem:[#allocation5] sm:$0xff] }
  0x5d   : > { %1604 = vmatpush.msra.mxu2 %v352_v15  ;;  %1620 = vmatpush.msra.mxu3 %v368_v16  ;;  %v358_v40 = vld [vmem:[#allocation5 + $0x88] sm:$0xff]  ;;  %v325_v41 = vld [vmem:[%s2073_s13] sm:$0xff]  ;;  %v327_v47 = vld [vmem:[%s2073_s13 + $0x10] sm:$0xff] }
  0x5e   : > { %379 = vmatpush.msra.mxu0 %v351_v17  ;;  %420 = vmatpush.msra.mxu1 %v367_v18  ;;  %v357_v42 = vld [vmem:[#allocation5 + $0x80] sm:$0xff]  ;;  %v326_v43 = vld [vmem:[%s2073_s13 + $0x8] sm:$0xff]  ;;  %v328_v48 = vld [vmem:[%s2073_s13 + $0x18] sm:$0xff] }
  0x5f   : > { %1605 = vmatpush.msra.mxu2 %v351_v17  ;;  %1621 = vmatpush.msra.mxu3 %v367_v18  ;;  %v333_v45 = vld [vmem:[%s2073_s13 + $0x40] sm:$0xff]  ;;  %v334_v46 = vld [vmem:[%s2073_s13 + $0x48] sm:$0xff]  ;;  %v335_v49 = vld [vmem:[%s2073_s13 + $0x50] sm:$0xff] }
  0x60   : > { %492 = vperm.xlu2 %1694, %v2106_v10   ;;  %482 = vperm.xlu1 %1693, %v2109_v11   ;;  %v336_v50 = vld [vmem:[%s2073_s13 + $0x58] sm:$0xff]  ;;  %v337_v51 = vld [vmem:[%s2073_s13 + $0x60] sm:$0xff]  ;;  %v338_v52 = vld [vmem:[%s2073_s13 + $0x68] sm:$0xff] }
  0x61   : > { %472 = vperm.xlu0 %1692, %v2112_v12   ;;  %380 = vmatpush.msra.mxu0 %v350_v19  ;;  %v329_v54 = vld [vmem:[%s2073_s13 + $0x20] sm:$0xff]  ;;  %v330_v55 = vld [vmem:[%s2073_s13 + $0x28] sm:$0xff]  ;;  %v339_v56 = vld [vmem:[%s2073_s13 + $0x70] sm:$0xff] }
  0x62   : > { %421 = vmatpush.msra.mxu1 %v366_v23  ;;  %1606 = vmatpush.msra.mxu2 %v350_v19  ;;  %v340_v57 = vld [vmem:[%s2073_s13 + $0x78] sm:$0xff]  ;;  %v331_v58 = vld [vmem:[%s2073_s13 + $0x30] sm:$0xff]  ;;  %v464_v63 = vld [vmem:[%s3054_s3] sm:$0xf] }
  0x63   : > { %381 = vmatpush.msra.mxu0 %v349_v22  ;;  %1622 = vmatpush.msra.mxu3 %v366_v23  ;;  %v332_v59 = vld [vmem:[%s2073_s13 + $0x38] sm:$0xff]  ;;  %v2172_v4 = vperm.slane %v464_v63, 0  ;;  %v2183_v7 = vperm.slane %v464_v63, 1 }
  0x64   : > { %422 = vmatpush.msra.mxu1 %v365_v26  ;;  %1607 = vmatpush.msra.mxu2 %v349_v22 }
  0x65   : > { %382 = vmatpush.msra.mxu0 %v348_v25  ;;  %1623 = vmatpush.msra.mxu3 %v365_v26  ;;  %v2198_v26 = vperm.slane %v464_v63, 2 }
  0x66   : > { %423 = vmatpush.msra.mxu1 %v364_v28  ;;  %1608 = vmatpush.msra.mxu2 %v348_v25 }
  0x67   : > { %383 = vmatpush.msra.mxu0 %v347_v27  ;;  %1624 = vmatpush.msra.mxu3 %v364_v28 }
  0x68   : > { %1695 = vset.pattern.permute.xlu2 %v1911_v24  ;;  %502 = vperm.xlu1 %1693, %v2118_v20  }
  0x69   : > { %497 = vperm.xlu0 %1692, %v2121_v21   ;;  %524 = vperm.xlu2 %1695, %v2100_v3  }
  0x6a   : > { %384 = vmatpush.msra.mxu0 %v346_v29  ;;  %424 = vmatpush.msra.mxu1 %v363_v30 }
  0x6b   : > { %1609 = vmatpush.msra.mxu2 %v347_v27  ;;  %1625 = vmatpush.msra.mxu3 %v363_v30  ;;  %v2203_v30 = vperm.slane %v464_v63, 3 }
  0x6c   : > { %385 = vmatpush.msra.mxu0 %v345_v31  ;;  %425 = vmatpush.msra.mxu1 %v362_v32 }
  0x6d   : > { %1610 = vmatpush.msra.mxu2 %v346_v29  ;;  %1626 = vmatpush.msra.mxu3 %v362_v32 }
  0x6e   : > { %386 = vmatpush.msra.mxu0 %v344_v33  ;;  %426 = vmatpush.msra.mxu1 %v361_v34 }
  0x6f   : > { %1611 = vmatpush.msra.mxu2 %v345_v31  ;;  %1627 = vmatpush.msra.mxu3 %v361_v34 }
  0x70   : > { %1697 = vset.pattern.permute.xlu1 %v1911_v24  ;;  %387 = vmatpush.msra.mxu0 %v343_v35 }
  0x71   : > { %1696 = vset.pattern.permute.xlu0 %v1911_v24  ;;  %532 = vperm.xlu1 %1697, %v2097_v2  }
  0x72   : > { %536 = vperm.xlu2 %1695, %v2109_v11   ;;  %528 = vperm.xlu0 %1696, %v2112_v12  }
  0x73   : > { %427 = vmatpush.msra.mxu1 %v360_v36  ;;  %388 = vmatpush.msra.mxu0 %v342_v37 }
  0x74   : > { %1612 = vmatpush.msra.mxu2 %v344_v33  ;;  %1628 = vmatpush.msra.mxu3 %v360_v36 }
  0x75   : > { %428 = vmatpush.msra.mxu1 %v359_v38  ;;  %389 = vmatpush.msra.mxu0 %v341_v39 }
  0x76   : > { %390 = vmatmul.f32.vlgmr.msra.gmra.mxu0 %v325_v41  ;;  %1613 = vmatpush.msra.mxu2 %v343_v35 }
  0x77   : > { %429 = vmatpush.msra.mxu1 %v358_v40  ;;  %1629 = vmatpush.msra.mxu3 %v359_v38 }
  0x78   : > { %1614 = vmatpush.msra.mxu2 %v342_v37 }
  0x79   : > { %540 = vperm.xlu1 %1697, %v2094_v1   ;;  %430 = vmatpush.msra.mxu1 %v357_v42 }
  0x7a   : > { %544 = vperm.xlu2 %1695, %v2106_v10   ;;  %548 = vperm.xlu0 %1696, %v2121_v21  }
  0x7b   : > { %431 = vmatmul.f32.vlgmr.msra.gmra.mxu1 %v326_v43  ;;  %1630 = vmatpush.msra.mxu3 %v358_v40 }
  0x7c   : > { %1615 = vmatpush.msra.mxu2 %v341_v39 }
  0x7d   : > { %1631 = vmatpush.msra.mxu3 %v357_v42  ;;  %402 = vmatmul.f32.vlgmr.msra.gmra.mxu2 %v333_v45 }
  0x7e   : > { %443 = vmatmul.f32.vlgmr.msra.gmra.mxu3 %v334_v46  ;;  %393 = vmatmul.f32.gmra.mxu0 %v327_v47 }
  0x81   : > { %552 = vperm.xlu1 %1697, %v2118_v20  }
  0x82   : > { %1698 = vset.pattern.permute.xlu2 %v1912_v44  ;;  %1699 = vset.pattern.permute.xlu0 %v1912_v44 }
  0x83   : > { %573 = vperm.xlu2 %1698, %v2100_v3   ;;  %577 = vperm.xlu0 %1699, %v2112_v12  }
  0x84   : > { %434 = vmatmul.f32.gmra.mxu1 %v328_v48 }
  0x85   : > { %405 = vmatmul.f32.gmra.mxu2 %v335_v49 }
  0x86   : > { %446 = vmatmul.f32.gmra.mxu3 %v336_v50  ;;  %396 = vmatmul.f32.gmra.mxu0 %v329_v54 }
  0x89   : > { %1700 = vset.pattern.permute.xlu1 %v1912_v44 }
  0x8a   : > { %581 = vperm.xlu1 %1700, %v2097_v2  }
  0x8b   : > { %585 = vperm.xlu2 %1698, %v2109_v11   ;;  %597 = vperm.xlu0 %1699, %v2121_v21  }
  0x8c   : > { %437 = vmatmul.f32.gmra.mxu1 %v330_v55 }
  0x8d   : > { %408 = vmatmul.f32.gmra.mxu2 %v337_v51 }
  0x8e   : > { %449 = vmatmul.f32.gmra.mxu3 %v338_v52  ;;  %399 = vmatmul.f32.gmra.mxu0 %v331_v58 }
  0x92   : > { %589 = vperm.xlu1 %1700, %v2094_v1  }
  0x93   : > { %593 = vperm.xlu2 %1698, %v2106_v10   ;;  %1702 = vset.pattern.permute.xlu0 %v1913_v53 }
  0x94   : > { %626 = vperm.xlu0 %1702, %v2112_v12   ;;  %440 = vmatmul.f32.gmra.mxu1 %v332_v59 }
  0x95   : > { %411 = vmatmul.f32.gmra.mxu2 %v339_v56 }
  0x96   : > { %452 = vmatmul.f32.gmra.mxu3 %v340_v57 }
  0x9a   : > { %601 = vperm.xlu1 %1700, %v2118_v20  }
  0x9b   : > { %1701 = vset.pattern.permute.xlu2 %v1913_v53 }
  0x9c   : > { %622 = vperm.xlu2 %1701, %v2100_v3   ;;  %646 = vperm.xlu0 %1702, %v2121_v21  }
  0xa2   : > { %1703 = vset.pattern.permute.xlu1 %v1913_v53 }
  0xa3   : > { %630 = vperm.xlu1 %1703, %v2097_v2  }
  0xa4   : > { %634 = vperm.xlu2 %1701, %v2109_v11  }
  0xab   : > { %638 = vperm.xlu1 %1703, %v2094_v1   ;;  %v2177_v1 = vld [vmem:[%s3055_s4] sm:$0xff] }
  0xac   : > { %642 = vperm.xlu2 %1701, %v2106_v10   ;;  %v2180_v5 = vperm.slane %v2177_v1, 1 }
  0xb2   : > { %v2164_v60 = vpop.permute.xlu2 %487 }
  0xb3   : > { %650 = vperm.xlu1 %1703, %v2118_v20  }
  0xba   : > { %v493_v61 = vpop.permute.xlu2 %492 }
  0xbb   : > { %v511_v6 = vmul.f32 %v2172_v4, %v493_v61 }
  0xbd   : > { %v520_v11 = vadd.f32 %v2180_v5, %v511_v6 }
  0xc3   : > { %v525_v62 = vpop.permute.xlu2 %524 }
  0xc4   : > { %v556_v24 = vmul.f32 %v2183_v7, %v525_v62 }
  0xca   : > { %v2170_v0 = vpop.permute.xlu1 %477 }
  0xcb   : > { %v468_v2 = vpop.permute.xlu0 %467  ;;  %v508_v6 = vmul.f32 %v2172_v4, %v2170_v0 }
  0xcc   : > { %v537_v3 = vpop.permute.xlu2 %536  ;;  %v506_v20 = vmul.f32 %v2172_v4, %v468_v2 }
  0xcd   : > { %v559_v36 = vmul.f32 %v2183_v7, %v537_v3 }
  0xce   : > { %v515_v25 = vadd.f32 %v2180_v5, %v506_v20 }
  0xd0   : > { %v564_v27 = vadd.f32 %v556_v24, %v515_v25 }
  0xd2   : > { %v483_v8 = vpop.permute.xlu1 %482 }
  0xd3   : > { %v473_v9 = vpop.permute.xlu0 %472  ;;  %v509_v31 = vmul.f32 %v2172_v4, %v483_v8 }
  0xd4   : > { %v545_v10 = vpop.permute.xlu2 %544  ;;  %v507_v41 = vmul.f32 %v2172_v4, %v473_v9 }
  0xd5   : > { %v561_v12 = vmul.f32 %v2183_v7, %v545_v10  ;;  %v518_v37 = vadd.f32 %v2180_v5, %v509_v31 }
  0xd6   : > { %v516_v47 = vadd.f32 %v2180_v5, %v507_v41 }
  0xd7   : > { %v2187_v13 = vadd.f32 %v561_v12, %v520_v11  ;;  %v567_v42 = vadd.f32 %v559_v36, %v518_v37  ;;  %v2237_v11 = vperm.slane %v2177_v1, 0 }
  0xda   : > { %v2189_v14 = vpop.permute.xlu1 %502 }
  0xdb   : > { %v498_v15 = vpop.permute.xlu0 %497 }
  0xdc   : > { %v512_v52 = vmul.f32 %v2172_v4, %v498_v15 }
  0xdd   : > { %v574_v16 = vpop.permute.xlu2 %573 }
  0xde   : > { %v605_v28 = vmul.f32 %v2198_v26, %v574_v16  ;;  %v521_v58 = vadd.f32 %v2180_v5, %v512_v52 }
  0xe0   : > { %v613_v34 = vadd.f32 %v605_v28, %v564_v27  ;;  %v510_v27 = vmul.f32 %v2172_v4, %v2164_v60 }
  0xe2   : > { %v519_v37 = vadd.f32 %v2180_v5, %v510_v27 }
  0xe3   : > { %v533_v17 = vpop.permute.xlu1 %532 }
  0xe4   : > { %v529_v18 = vpop.permute.xlu0 %528  ;;  %v558_v12 = vmul.f32 %v2183_v7, %v533_v17 }
  0xe5   : > { %v586_v19 = vpop.permute.xlu2 %585  ;;  %v557_v48 = vmul.f32 %v2183_v7, %v529_v18  ;;  %v517_v18 = vadd.f32 %v2180_v5, %v508_v6 }
  0xe6   : > { %v608_v39 = vmul.f32 %v2198_v26, %v586_v19 }
  0xe7   : > { %v565_v53 = vadd.f32 %v557_v48, %v516_v47  ;;  %v566_v20 = vadd.f32 %v558_v12, %v517_v18 }
  0xe8   : > { %v616_v45 = vadd.f32 %v608_v39, %v567_v42 }
  0xeb   : > { %v2192_v21 = vpop.permute.xlu1 %540 }
  0xec   : > { %v549_v22 = vpop.permute.xlu0 %548 }
  0xed   : > { %v2194_v23 = vpop.permute.xlu2 %593  ;;  %v562_v59 = vmul.f32 %v2183_v7, %v549_v22 }
  0xee   : > { %v610_v39 = vmul.f32 %v2198_v26, %v2194_v23 }
  0xef   : > { %v570_v3 = vadd.f32 %v562_v59, %v521_v58 }
  0xf3   : > { %v2201_v29 = vpop.permute.xlu1 %552  ;;  %v2222_v55 = vpop.f32.mrf.mxu0 }
  0xf4   : > { %v563_v47 = vmul.f32 %v2183_v7, %v2201_v29 }
  0xf5   : > { %v578_v32 = vpop.permute.xlu0 %577 }
  0xf6   : > { %v623_v33 = vpop.permute.xlu2 %622  ;;  %v606_v50 = vmul.f32 %v2198_v26, %v578_v32 }
  0xf7   : > { %v654_v35 = vmul.f32 %v2203_v30, %v623_v33  ;;  %v560_v33 = vmul.f32 %v2183_v7, %v2192_v21 }
  0xf8   : > { %v614_v56 = vadd.f32 %v606_v50, %v565_v53  ;;  %v2229_v62 = vpop.f32.mrf.mxu1 }
  0xf9   : > { %v2209_v38 = vadd.f32 %v654_v35, %v613_v34  ;;  %v568_v41 = vadd.f32 %v560_v33, %v519_v37 }
  0xfb   : > { %872 = vadd.xlane.f32.xlu0 %v2209_v38  ;;  %v394_v15 = vpop.f32.mrf.mxu0 }
  0xfc   : > { %v582_v40 = vpop.permute.xlu1 %581  ;;  %v395_v0 = vadd.f32 %v394_v15, %v2237_v11 }
  0xfd   : > { %v598_v43 = vpop.permute.xlu0 %597  ;;  %v607_v19 = vmul.f32 %v2198_v26, %v582_v40 }
  0xfe   : > { %v635_v44 = vpop.permute.xlu2 %634  ;;  %v611_v63 = vmul.f32 %v2198_v26, %v598_v43  ;;  %v513_v43 = vmul.f32 %v2172_v4, %v2189_v14 }
  0xff   : > { %v657_v46 = vmul.f32 %v2203_v30, %v635_v44  ;;  %v615_v28 = vadd.f32 %v607_v19, %v566_v20  ;;  %v618_v44 = vadd.f32 %v610_v39, %v2187_v13 }
 0x100   : > { %v619_v9 = vadd.f32 %v611_v63, %v570_v3  ;;  %v403_v24 = vpop.f32.mrf.mxu2  ;;  %v522_v52 = vadd.f32 %v2180_v5, %v513_v43  ;;  %v896_v3 = vmul.f32 %v2209_v38, %v2209_v38 }
 0x101   : > { %v2217_v49 = vadd.f32 %v657_v46, %v616_v45  ;;  %v435_v22 = vpop.f32.mrf.mxu1  ;;  %v404_v32 = vadd.f32 %v403_v24, %v2237_v11  ;;  %v444_v35 = vpop.f32.mrf.mxu3 }
 0x102   : > { %v2249_v31 = vadd.f32 %v435_v22, %v395_v0  ;;  %v571_v13 = vadd.f32 %v563_v47, %v522_v52 }
 0x103   : > { %878 = vadd.xlane.f32.xlu0 %v2217_v49  ;;  %v2262_v40 = vadd.f32 %v444_v35, %v404_v32 }
 0x104   : > { %v590_v51 = vpop.permute.xlu1 %589  ;;  %v695_v29 = vmul.f32 %v2249_v31, %v2249_v31 }
 0x105   : > { %v609_v60 = vmul.f32 %v2198_v26, %v590_v51  ;;  %v698_v46 = vmul.f32 %v2262_v40, %v2262_v40 }
 0x106   : > { %v627_v54 = vpop.permute.xlu0 %626  ;;  %v643_v36 = vpop.permute.xlu2 %642 }
 0x107   : > { %v655_v57 = vmul.f32 %v2203_v30, %v627_v54  ;;  %v659_v21 = vmul.f32 %v2203_v30, %v643_v36  ;;  %v617_v45 = vadd.f32 %v609_v60, %v568_v41 }
 0x108   : > { %v406_v51 = vpop.f32.mrf.mxu2 }
 0x109   : > { %v2227_v61 = vadd.f32 %v655_v57, %v614_v56  ;;  %v2273_v48 = vadd.f32 %v659_v21, %v618_v44  ;;  %v447_v14 = vpop.f32.mrf.mxu3  ;;  %v407_v58 = vadd.f32 %v406_v51, %v2237_v11  ;;  %v438_v6 = vpop.f32.mrf.mxu1 }
 0x10b   : > { %874 = vadd.xlane.f32.xlu1 %v2227_v61  ;;  %v897_v5 = vmul.f32 %v2227_v61, %v2227_v61  ;;  %v2295_v63 = vadd.f32 %v447_v14, %v407_v58 }
 0x10c   : > { %v602_v2 = vpop.permute.xlu1 %601 }
 0x10d   : > { %v612_v4 = vmul.f32 %v2198_v26, %v602_v2  ;;  %v392_v26 = vadd.f32 %v2222_v55, %v2237_v11  ;;  %v397_v2 = vpop.f32.mrf.mxu0  ;;  %v699_v19 = vmul.f32 %v2295_v63, %v2295_v63 }
 0x10e   : > { %v647_v8 = vpop.permute.xlu0 %646  ;;  %v398_v55 = vadd.f32 %v397_v2, %v2237_v11 }
 0x10f   : > { %v660_v10 = vmul.f32 %v2203_v30, %v647_v8  ;;  %v620_v54 = vadd.f32 %v612_v4, %v571_v13 }
 0x110   : > { %v409_v57 = vpop.f32.mrf.mxu2 }
 0x111   : > { %v2240_v16 = vadd.f32 %v660_v10, %v619_v9  ;;  %v450_v59 = vpop.f32.mrf.mxu3  ;;  %v2302_v9 = vadd.f32 %v438_v6, %v398_v55  ;;  %v441_v24 = vpop.f32.mrf.mxu1 }
 0x113   : > { %884 = vadd.xlane.f32.xlu0 %v2240_v16  ;;  %v902_v36 = vmul.f32 %v2240_v16, %v2240_v16 }
 0x115   : > { %v631_v25 = vpop.permute.xlu1 %630  ;;  %v400_v20 = vpop.f32.mrf.mxu0 }
 0x116   : > { %v656_v17 = vmul.f32 %v2203_v30, %v631_v25  ;;  %v401_v22 = vadd.f32 %v400_v20, %v2237_v11  ;;  %v410_v25 = vadd.f32 %v409_v57, %v2237_v11 }
 0x118   : > { %v2254_v34 = vadd.f32 %v656_v17, %v615_v28  ;;  %v412_v8 = vpop.f32.mrf.mxu2  ;;  %v2319_v27 = vadd.f32 %v441_v24, %v401_v22  ;;  %v696_v28 = vmul.f32 %v2302_v9, %v2302_v9  ;;  %v901_v17 = vmul.f32 %v2273_v48, %v2273_v48 }
 0x119   : > { %v453_v12 = vpop.f32.mrf.mxu3  ;;  %v2325_v32 = vadd.f32 %v450_v59, %v410_v25 }
 0x11a   : > { %876 = vadd.xlane.f32.xlu2 %v2254_v34  ;;  %v898_v15 = vmul.f32 %v2254_v34, %v2254_v34  ;;  %v697_v35 = vmul.f32 %v2319_v27, %v2319_v27 }
 0x11b   : > { %672 = vadd.xlane.f32.xlu0 %v2249_v31  ;;  %v700_v33 = vmul.f32 %v2325_v32, %v2325_v32 }
 0x11d   : > { %v639_v42 = vpop.permute.xlu1 %638 }
 0x11e   : > { %v658_v23 = vmul.f32 %v2203_v30, %v639_v42 }
 0x120   : > { %v2275_v50 = vadd.f32 %v658_v23, %v617_v45 }
 0x122   : > { %3074 = vst [vmem:[#allocation11_spill] sm:$0xff] %v2275_v50  ;;  %882 = vadd.xlane.f32.xlu2 %v2273_v48  ;;  %880 = vadd.xlane.f32.xlu1 %v2275_v50  ;;  %v900_v37 = vmul.f32 %v2275_v50, %v2275_v50 }
 0x123   : > { %710 = vadd.xlane.f32.xlu0 %v698_v46 }
 0x125   : > { %v651_v53 = vpop.permute.xlu1 %650 }
 0x126   : > { %v661_v7 = vmul.f32 %v2203_v30, %v651_v53  ;;  %v2293_v30 = vadd.f32 %v2229_v62, %v392_v26  ;;  %v413_v62 = vadd.f32 %v412_v8, %v2237_v11  ;;  %v899_v11 = vmul.f32 %v2217_v49, %v2217_v49 }
 0x128   : > { %v2284_v56 = vadd.f32 %v661_v7, %v620_v54  ;;  %v694_v10 = vmul.f32 %v2293_v30, %v2293_v30  ;;  %v2310_v18 = vadd.f32 %v453_v12, %v413_v62 }
 0x12a   : > { %3075 = vst [vmem:[#allocation12_spill] sm:$0xff] %v2284_v56  ;;  %886 = vadd.xlane.f32.xlu1 %v2284_v56  ;;  %906 = vadd.xlane.f32.xlu2 %v897_v5  ;;  %v701_v0 = vmul.f32 %v2310_v18, %v2310_v18  ;;  %v903_v39 = vmul.f32 %v2284_v56, %v2284_v56 }
 0x12b   : > { %704 = vadd.xlane.f32.xlu0 %v695_v29  ;;  %3076 = vst [vmem:[#allocation13_spill] sm:$0xff] %v2310_v18 }
 0x132   : > { %904 = vadd.xlane.f32.xlu1 %v896_v3  ;;  %670 = vadd.xlane.f32.xlu2 %v2293_v30 }
 0x133   : > { %680 = vadd.xlane.f32.xlu0 %v2295_v63 }
 0x13a   : > { %674 = vadd.xlane.f32.xlu1 %v2302_v9  ;;  %702 = vadd.xlane.f32.xlu2 %v694_v10 }
 0x13b   : > { %908 = vadd.xlane.f32.xlu0 %v898_v15 }
 0x142   : > { %712 = vadd.xlane.f32.xlu1 %v699_v19  ;;  %678 = vadd.xlane.f32.xlu2 %v2262_v40 }
 0x143   : > { %716 = vadd.xlane.f32.xlu0 %v701_v0 }
 0x14a   : > { %706 = vadd.xlane.f32.xlu1 %v696_v28  ;;  %676 = vadd.xlane.f32.xlu2 %v2319_v27 }
 0x14b   : > { %914 = vadd.xlane.f32.xlu0 %v901_v17 }
 0x152   : > { %682 = vadd.xlane.f32.xlu1 %v2325_v32  ;;  %714 = vadd.xlane.f32.xlu2 %v700_v33 }
 0x15a   : > { %910 = vadd.xlane.f32.xlu1 %v899_v11  ;;  %708 = vadd.xlane.f32.xlu2 %v697_v35 }
 0x162   : > { %916 = vadd.xlane.f32.xlu1 %v902_v36  ;;  %684 = vadd.xlane.f32.xlu2 %v2310_v18 }
 0x16a   : > { %912 = vadd.xlane.f32.xlu2 %v900_v37 }
 0x16e   : > { %v873_v60 = vpop.xlane.xlu0 %872 }
 0x16f   : > { %v2362_v26 = vmul.f32 0.0078125, %v873_v60 }
 0x171   : > { %v928_v6 = vmul.f32 %v2362_v26, %v2362_v26 }
 0x172   : > { %918 = vadd.xlane.f32.xlu2 %v903_v39  ;;  %v2378_v39 = vperm.slane %v2177_v1, 4 }
 0x176   : > { %v2342_v41 = vpop.xlane.xlu0 %878 }
 0x17e   : > { %v875_v42 = vpop.xlane.xlu1 %874 }
 0x17f   : > { %v2352_v47 = vmul.f32 0.0078125, %v875_v42 }
 0x181   : > { %v929_v14 = vmul.f32 %v2352_v47, %v2352_v47 }
 0x186   : > { %v2344_v21 = vpop.xlane.xlu0 %884 }
 0x18d   : > { %v877_v43 = vpop.xlane.xlu2 %876 }
 0x18e   : > { %v673_v44 = vpop.xlane.xlu0 %672  ;;  %v2366_v15 = vmul.f32 0.0078125, %v877_v43  ;;  %v953_v43 = vsub.f32 %v2227_v61, %v2352_v47 }
 0x18f   : > { %v2354_v51 = vmul.f32 0.0078125, %v673_v44  ;;  %v2385_v44 = vperm.slane %v2177_v1, 5 }
 0x190   : > { %v930_v11 = vmul.f32 %v2366_v15, %v2366_v15 }
 0x191   : > { %v727_v52 = vmul.f32 %v2354_v51, %v2354_v51 }
 0x195   : > { %v2346_v45 = vpop.xlane.xlu2 %882  ;;  %v2348_v23 = vpop.xlane.xlu1 %880 }
 0x196   : > { %v2350_v46 = vpop.xlane.xlu0 %710 }
 0x19d   : > { %v2358_v4 = vpop.xlane.xlu1 %886  ;;  %v907_v13 = vpop.xlane.xlu2 %906 }
 0x19e   : > { %v921_v53 = vmul.f32 0.0078125, %v907_v13  ;;  %v705_v54 = vpop.xlane.xlu0 %704 }
 0x19f   : > { %v719_v7 = vmul.f32 0.0078125, %v705_v54 }
 0x1a0   : > { %v937_v29 = vsub.f32 %v921_v53, %v929_v14 }
 0x1a1   : > { %v735_v5 = vsub.f32 %v719_v7, %v727_v52 }
 0x1a2   : > { %v945_v57 = vmax.f32 %v937_v29, 0.0 }
 0x1a3   : > { %v743_v58 = vmax.f32 %v735_v5, 0.0 }
 0x1a4   : > { %v961_v59 = vadd.f32 1e-05, %v945_v57  ;;  %v2392_v57 = vperm.slane %v2177_v1, 2 }
 0x1a5   : > { %v759_v2 = vadd.f32 1e-05, %v743_v58  ;;  %v905_v3 = vpop.xlane.xlu1 %904  ;;  %v671_v55 = vpop.xlane.xlu2 %670 }
 0x1a6   : > { %1704 = vrsqrt.f32 %v961_v59  ;;  %v920_v8 = vmul.f32 0.0078125, %v905_v3  ;;  %v681_v62 = vpop.xlane.xlu0 %680  ;;  %v2370_v20 = vmul.f32 0.0078125, %v671_v55  ;;  %vm984_vm3 = vweird.f32 %v961_v59 }
 0x1a7   : > { %1706 = vrsqrt.f32 %v759_v2  ;;  %vm782_vm0 = vweird.f32 %v759_v2  ;;  %v2387_v7 = vmul.f32 0.0078125, %v681_v62 }
 0x1a8   : > { %v936_v10 = vsub.f32 %v920_v8, %v928_v6  ;;  %v726_v42 = vmul.f32 %v2370_v20, %v2370_v20 }
 0x1a9   : > { %v731_v55 = vmul.f32 %v2387_v7, %v2387_v7 }
 0x1aa   : > { %v944_v12 = vmax.f32 %v936_v10, 0.0 }
 0x1ac   : > { %v1705_v19 = vpop.eup %1704  ;;  %v2368_v0 = vadd.f32 1e-05, %v944_v12 }
 0x1ad   : > { %v1707_v22 = vpop.eup %1706  ;;  %v979_v24 = vmul.f32 %v1705_v19, %v961_v59  ;;  %v2372_v25 = vpop.xlane.xlu1 %674  ;;  %vm985_vm2 = vweird.f32 %v1705_v19 }
 0x1ae   : > { %v703_v28 = vpop.xlane.xlu2 %702  ;;  %v777_v17 = vmul.f32 %v1707_v22, %v759_v2  ;;  %1708 = vrsqrt.f32 %v2368_v0  ;;  %v909_v33 = vpop.xlane.xlu0 %908  ;;  %vm783_vm1 = vweird.f32 %v1707_v22  ;;  %vm986_vm5 = vmor %vm984_vm3, %vm985_vm2  ;;  %v2438_v3 = vmul.f32 0.0078125, %v2372_v25 }
 0x1af   : > { %v980_v35 = vmul.f32 %v1705_v19, %v979_v24  ;;  %v922_v36 = vmul.f32 0.0078125, %v909_v33  ;;  %v718_v37 = vmul.f32 0.0078125, %v703_v28  ;;  %vm2394_vm4 = vmor %vm782_vm0, %vm783_vm1  ;;  %vm974_vm7 = vweird.f32 %v2368_v0 }
 0x1b0   : > { %v778_v60 = vmul.f32 %v1707_v22, %v777_v17  ;;  %v751_v17 = vsub.f32 %v2249_v31, %v2354_v51  ;;  %v722_v51 = vmul.f32 0.0078125, %v2350_v46 }
 0x1b1   : > { %v981_v52 = vmul.f32 0.5, %v980_v35  ;;  %v938_v13 = vsub.f32 %v922_v36, %v930_v11  ;;  %v734_v53 = vsub.f32 %v718_v37, %v726_v42  ;;  %v2417_v36 = vperm.slane %v2177_v1, 3 }
 0x1b2   : > { %v779_v14 = vmul.f32 0.5, %v778_v60  ;;  %v2427_v1 = vmul.f32 0.0078125, %v2346_v45 }
 0x1b3   : > { %v982_v54 = vsub.f32 1.5, %v981_v52  ;;  %v946_v29 = vmax.f32 %v938_v13, 0.0  ;;  %v742_v47 = vmax.f32 %v734_v53, 0.0 }
 0x1b4   : > { %v2389_v5 = vpop.eup %1708  ;;  %v780_v61 = vsub.f32 1.5, %v779_v14 }
 0x1b5   : > { %v983_v58 = vmul.f32 %v1705_v19, %v982_v54  ;;  %v969_v2 = vmul.f32 %v2389_v5, %v2368_v0  ;;  %v2402_v6 = vadd.f32 1e-05, %v946_v29  ;;  %v713_v8 = vpop.xlane.xlu1 %712  ;;  %v2405_v10 = vadd.f32 1e-05, %v742_v47 }
 0x1b6   : > { %v679_v59 = vpop.xlane.xlu2 %678  ;;  %v781_v62 = vmul.f32 %v1707_v22, %v780_v61  ;;  %v723_v12 = vmul.f32 0.0078125, %v713_v8  ;;  %v2407_v24 = vpop.xlane.xlu0 %716  ;;  %vm975_vm6 = vweird.f32 %v2389_v5  ;;  %v952_v8 = vsub.f32 %v2209_v38, %v2362_v26 }
 0x1b7   : > { %v2409_v28 = vmul.f32 0.0078125, %v679_v59  ;;  %v987_v33 = vsel %vm986_vm5, %v1705_v19, %v983_v58  ;;  %v970_v11 = vmul.f32 %v2389_v5, %v969_v2  ;;  %1710 = vrsqrt.f32 %v2402_v6  ;;  %vm2451_vm8 = vmor %vm974_vm7, %vm975_vm6 }
 0x1b8   : > { %v1050_v35 = vmul.f32 %v2378_v39, %v987_v33  ;;  %v785_v37 = vsel %vm2394_vm4, %v1707_v22, %v781_v62  ;;  %1712 = vrsqrt.f32 %v2405_v10  ;;  %v739_v52 = vsub.f32 %v723_v12, %v731_v55 }
 0x1b9   : > { %v848_v60 = vmul.f32 %v2392_v57, %v785_v37  ;;  %v971_v42 = vmul.f32 0.5, %v970_v11  ;;  %v730_v31 = vmul.f32 %v2409_v28, %v2409_v28  ;;  %v728_v33 = vmul.f32 %v2438_v3, %v2438_v3 }
 0x1ba   : > { %v1058_v19 = vmul.f32 %v1050_v35, %v953_v43  ;;  %v747_v53 = vmax.f32 %v739_v52, 0.0  ;;  %v933_v38 = vmul.f32 %v2427_v1, %v2427_v1  ;;  %v2470_v52 = vmul.f32 0.0078125, %v2344_v21 }
 0x1bb   : > { %v856_v13 = vmul.f32 %v848_v60, %v751_v17  ;;  %v972_v14 = vsub.f32 1.5, %v971_v42  ;;  %v738_v54 = vsub.f32 %v722_v51, %v730_v31  ;;  %v2449_v17 = vmul.f32 0.0078125, %v2342_v41 }
 0x1bc   : > { %v1067_v22 = vadd.f32 %v2385_v44, %v1058_v19  ;;  %v2435_v58 = vadd.f32 1e-05, %v747_v53  ;;  %vm772_vm9 = vweird.f32 %v2405_v10  ;;  %v2497_v25 = vmul.f32 %v2470_v52, %v2470_v52 }
 0x1bd   : > { %v2430_v29 = vpop.eup %1710  ;;  %v865_v61 = vadd.f32 %v2417_v36, %v856_v13  ;;  %v973_v47 = vmul.f32 %v2389_v5, %v972_v14  ;;  %v707_v46 = vpop.xlane.xlu1 %706  ;;  %v746_v2 = vmax.f32 %v738_v54, 0.0  ;;  %vm994_vm13 = vweird.f32 %v2402_v6 }
 0x1be   : > { %v1713_v43 = vpop.eup %1712  ;;  %v989_v45 = vmul.f32 %v2430_v29, %v2402_v6  ;;  %v720_v55 = vmul.f32 0.0078125, %v707_v46  ;;  %v915_v12 = vpop.xlane.xlu0 %914  ;;  %1714 = vrsqrt.f32 %v2435_v58  ;;  %vm995_vm10 = vweird.f32 %v2430_v29 }
 0x1bf   : > { %v2444_v59 = vadd.f32 %v1067_v22, %v865_v61  ;;  %v767_v62 = vmul.f32 %v1713_v43, %v2405_v10  ;;  %v977_v41 = vsel %vm2451_vm8, %v2389_v5, %v973_v47  ;;  %v2467_v37 = vadd.f32 1e-05, %v746_v2  ;;  %vm2507_vm14 = vmor %vm994_vm13, %vm995_vm10 }
 0x1c0   : > { %v990_v11 = vmul.f32 %v2430_v29, %v989_v45  ;;  %v736_v60 = vsub.f32 %v720_v55, %v728_v33  ;;  %v925_v42 = vmul.f32 0.0078125, %v915_v12  ;;  %v1049_v53 = vmul.f32 %v2378_v39, %v977_v41  ;;  %v677_v33 = vpop.xlane.xlu2 %676 }
 0x1c1   : > { %v2462_v26 = vmul.f32 0.70710677, %v2444_v59  ;;  %v768_v0 = vmul.f32 %v1713_v43, %v767_v62  ;;  %vm773_vm11 = vweird.f32 %v1713_v43  ;;  %1716 = vrsqrt.f32 %v2467_v37 }
 0x1c2   : > { %v991_v35 = vmul.f32 0.5, %v990_v11  ;;  %v744_v13 = vmax.f32 %v736_v60, 0.0  ;;  %v941_v5 = vsub.f32 %v925_v42, %v933_v38  ;;  %v2491_v62 = vmul.f32 %v2449_v17, %v2449_v17  ;;  %vm774_vm12 = vmor %vm772_vm9, %vm773_vm11 }
 0x1c3   : > { %v1138_v31 = vmul.f32 %v2462_v26, %v2462_v26  ;;  %v769_v51 = vmul.f32 0.5, %v768_v0  ;;  %v1057_v0 = vmul.f32 %v1049_v53, %v952_v8  ;;  %v2525_v8 = vmul.f32 0.0078125, %v2348_v23 }
 0x1c4   : > { %v992_v19 = vsub.f32 1.5, %v991_v35  ;;  %v2479_v54 = vpop.eup %1714  ;;  %v2483_v61 = vadd.f32 1e-05, %v744_v13  ;;  %v949_v47 = vmax.f32 %v941_v5, 0.0  ;;  %v750_v35 = vsub.f32 %v2293_v30, %v2370_v20 }
 0x1c5   : > { %v2476_v14 = vmin.f32 %v1138_v31, 16.0  ;;  %v770_v22 = vsub.f32 1.5, %v769_v51  ;;  %v817_v55 = vmul.f32 %v2479_v54, %v2435_v58  ;;  %v954_v20 = vsub.f32 %v2254_v34, %v2366_v15 }
 0x1c6   : > { %v993_v21 = vmul.f32 %v2430_v29, %v992_v19  ;;  %1718 = vrsqrt.f32 %v2483_v61  ;;  %v957_v5 = vsub.f32 %v2273_v48, %v2427_v1  ;;  %vm822_vm15 = vweird.f32 %v2435_v58 }
 0x1c7   : > { %v1140_v46 = vmul.f32 2.1237322e-06, %v2476_v14  ;;  %v1151_v45 = vmul.f32 3.8918573e-05, %v2476_v14  ;;  %v771_v2 = vmul.f32 %v1713_v43, %v770_v22  ;;  %v818_v42 = vmul.f32 %v2479_v54, %v817_v55  ;;  %v2520_v30 = vpop.eup %1716 }
 0x1c8   : > { %v997_v6 = vsel %vm2507_vm14, %v2430_v29, %v993_v21  ;;  %v1066_v21 = vadd.f32 %v2385_v44, %v1057_v0  ;;  %v2542_v55 = vmul.f32 0.0078125, %v2358_v4  ;;  %vm823_vm0 = vweird.f32 %v2479_v54 }
 0x1c9   : > { %v1141_v11 = vadd.f32 0.00028619796, %v1140_v46  ;;  %v1152_v38 = vadd.f32 0.001143296, %v1151_v45  ;;  %v775_v41 = vsel %vm774_vm12, %v1713_v43, %v771_v2  ;;  %v2518_v43 = vadd.f32 1e-05, %v949_v47  ;;  %vm2569_vm1 = vmor %vm822_vm15, %vm823_vm0 }
 0x1ca   : > { %v847_v10 = vmul.f32 %v2392_v57, %v775_v41  ;;  %v819_v13 = vmul.f32 0.5, %v818_v42  ;;  %v1051_v47 = vmul.f32 %v2378_v39, %v997_v6  ;;  %v807_v45 = vmul.f32 %v2520_v30, %v2467_v37  ;;  %3083 = vst [vmem:[#allocation14_spill] sm:$0xff] %v2542_v55  ;;  %v683_v41 = vpop.xlane.xlu1 %682 }
 0x1cb   : > { %v1142_v31 = vmul.f32 %v1141_v11, %v2476_v14  ;;  %v1153_v51 = vmul.f32 %v1152_v38, %v2476_v14  ;;  %1720 = vrsqrt.f32 %v2518_v43  ;;  %v755_v11 = vsub.f32 %v2295_v63, %v2387_v7  ;;  %v715_v63 = vpop.xlane.xlu2 %714 }
 0x1cc   : > { %v855_v19 = vmul.f32 %v847_v10, %v750_v35  ;;  %v2530_v29 = vpop.eup %1718  ;;  %v820_v15 = vsub.f32 1.5, %v819_v13  ;;  %v2550_v10 = vmul.f32 0.0078125, %v677_v33  ;;  %v1059_v42 = vmul.f32 %v1051_v47, %v954_v20 }
 0x1cd   : > { %v1143_v53 = vadd.f32 0.0036580483, %v1142_v31  ;;  %v1154_v22 = vadd.f32 0.014752088, %v1153_v51  ;;  %v787_v2 = vmul.f32 %v2530_v29, %v2483_v61  ;;  %v752_v33 = vsub.f32 %v2302_v9, %v2438_v3 }
 0x1ce   : > { %v864_v34 = vadd.f32 %v2417_v36, %v855_v19  ;;  %v821_v4 = vmul.f32 %v2479_v54, %v820_v15  ;;  %v808_v19 = vmul.f32 %v2520_v30, %v807_v45  ;;  %vm792_vm2 = vweird.f32 %v2483_v61 }
 0x1cf   : > { %v1144_v23 = vmul.f32 %v1143_v53, %v2476_v14  ;;  %v1155_v46 = vmul.f32 %v1154_v22, %v2476_v14  ;;  %v788_v60 = vmul.f32 %v2530_v29, %v787_v2  ;;  %v2565_v22 = vmul.f32 0.0078125, %v683_v41 }
 0x1d0   : > { %v2546_v38 = vadd.f32 %v1066_v21, %v864_v34  ;;  %vm793_vm3 = vweird.f32 %v2530_v29  ;;  %v825_v3 = vsel %vm2569_vm1, %v2479_v54, %v821_v4  ;;  %v1068_v58 = vadd.f32 %v2385_v44, %v1059_v42 }
 0x1d1   : > { %v1145_v0 = vadd.f32 0.05243302, %v1144_v23  ;;  %v1156_v35 = vadd.f32 0.112945676, %v1155_v46  ;;  %v1721_v7 = vpop.eup %1720  ;;  %v789_v13 = vmul.f32 0.5, %v788_v60  ;;  %v2582_v45 = vmul.f32 0.5, %v808_v19  ;;  %vm794_vm4 = vmor %vm792_vm2, %vm793_vm3 }
 0x1d2   : > { %v2553_v31 = vmul.f32 0.70710677, %v2546_v38  ;;  %v1019_v53 = vmul.f32 %v1721_v7, %v2518_v43  ;;  %v729_v2 = vmul.f32 %v2550_v10, %v2550_v10  ;;  %v732_v42 = vmul.f32 %v2565_v22, %v2565_v22 }
 0x1d3   : > { %v1146_v51 = vmul.f32 %v1145_v0, %v2476_v14  ;;  %v1157_v6 = vmul.f32 %v1156_v35, %v2476_v14  ;;  %v790_v15 = vsub.f32 1.5, %v789_v13  ;;  %vm1024_vm5 = vweird.f32 %v2518_v43 }
 0x1d4   : > { %v1098_v20 = vmul.f32 %v2553_v31, %v2553_v31  ;;  %v1020_v23 = vmul.f32 %v1721_v7, %v1019_v53  ;;  %v911_v53 = vpop.xlane.xlu1 %910  ;;  %vm1025_vm6 = vweird.f32 %v1721_v7  ;;  %vm813_vm12 = vweird.f32 %v2520_v30 }
 0x1d5   : > { %v1147_v21 = vadd.f32 0.18741608, %v1146_v51  ;;  %v1158_v47 = vadd.f32 0.4994258, %v1157_v6  ;;  %v791_v35 = vmul.f32 %v2530_v29, %v790_v15  ;;  %v852_v51 = vmul.f32 %v2392_v57, %v825_v3  ;;  %v709_v3 = vpop.xlane.xlu2 %708  ;;  %vm1026_vm7 = vmor %vm1024_vm5, %vm1025_vm6 }
 0x1d6   : > { %v2575_v9 = vmin.f32 %v1098_v20, 16.0  ;;  %v1021_v60 = vmul.f32 0.5, %v1020_v23  ;;  %v721_v12 = vmul.f32 0.0078125, %v709_v3  ;;  %vm812_vm13 = vweird.f32 %v2467_v37 }
 0x1d7   : > { %v1159_v46 = vmul.f32 %v1158_v47, %v2476_v14  ;;  %v1148_v54 = vmul.f32 %v1147_v21, %v2476_v14  ;;  %v795_v13 = vsel %vm794_vm4, %v2530_v29, %v791_v35  ;;  %v724_v14 = vmul.f32 0.0078125, %v715_v63  ;;  %vm2726_vm3 = vmor %vm812_vm13, %vm813_vm12 }
 0x1d8   : > { %v1100_v41 = vmul.f32 2.1237322e-06, %v2575_v9  ;;  %v1111_v0 = vmul.f32 3.8918573e-05, %v2575_v9  ;;  %v1022_v20 = vsub.f32 1.5, %v1021_v60  ;;  %v810_v47 = vsub.f32 1.5, %v2582_v45 }
 0x1d9   : > { %v2590_v4 = vadd.f32 1.0, %v1159_v46  ;;  %v849_v34 = vmul.f32 %v2392_v57, %v795_v13  ;;  %v860_v15 = vmul.f32 %v852_v51, %v755_v11  ;;  %v740_v29 = vsub.f32 %v724_v14, %v732_v42 }
 0x1da   : > { %v1101_v6 = vadd.f32 0.00028619796, %v1100_v41  ;;  %v1112_v19 = vadd.f32 0.001143296, %v1111_v0  ;;  %v1023_v23 = vmul.f32 %v1721_v7, %v1022_v20  ;;  %v923_v46 = vmul.f32 0.0078125, %v911_v53 }
 0x1db   : > { %1722 = vrcp.f32 %v2590_v4  ;;  %v1149_v41 = vadd.f32 1.1283791, %v1148_v54  ;;  %v857_v60 = vmul.f32 %v849_v34, %v752_v33  ;;  %v869_v33 = vadd.f32 %v2417_v36, %v860_v15 }
 0x1dc   : > { %v1102_v21 = vmul.f32 %v1101_v6, %v2575_v9  ;;  %v1113_v61 = vmul.f32 %v1112_v19, %v2575_v9  ;;  %v1027_v63 = vsel %vm1026_vm7, %v1721_v7, %v1023_v23  ;;  %v748_v6 = vmax.f32 %v740_v29, 0.0 }
 0x1dd   : > { %v939_v19 = vsub.f32 %v923_v46, %v2491_v62  ;;  %v866_v51 = vadd.f32 %v2417_v36, %v857_v60  ;;  %v1054_v54 = vmul.f32 %v2378_v39, %v1027_v63  ;;  %v737_v53 = vsub.f32 %v721_v12, %v729_v2 }
 0x1de   : > { %v1103_v0 = vadd.f32 0.0036580483, %v1102_v21  ;;  %v1114_v35 = vadd.f32 0.014752088, %v1113_v61  ;;  %v2615_v20 = vadd.f32 1e-05, %v748_v6  ;;  %v1150_v7 = vmul.f32 %v1149_v41, %v2462_v26 }
 0x1df   : > { %v947_v43 = vmax.f32 %v939_v19, 0.0  ;;  %v1170_v61 = vand.u32 2147483647, %v2590_v4  ;;  %v2620_v34 = vadd.f32 %v1068_v58, %v866_v51  ;;  %v1062_v3 = vmul.f32 %v1054_v54, %v957_v5 }
 0x1e0   : > { %v1104_v13 = vmul.f32 %v1103_v0, %v2575_v9  ;;  %v1115_v11 = vmul.f32 %v1114_v35, %v2575_v9  ;;  %1724 = vrsqrt.f32 %v2615_v20  ;;  %v1172_v2 = vand.u32 2147483648, %v2590_v4 }
 0x1e1   : > { %v1723_v42 = vpop.eup %1722  ;;  %v2628_v26 = vadd.f32 1e-05, %v947_v43  ;;  %v2632_v29 = vmul.f32 0.70710677, %v2620_v34  ;;  %v1071_v58 = vadd.f32 %v2385_v44, %v1062_v3  ;;  %v745_v46 = vmax.f32 %v737_v53, 0.0 }
 0x1e2   : > { %v1162_v62 = vmul.f32 %v1723_v42, %v2590_v4  ;;  %v1105_v14 = vadd.f32 0.05243302, %v1104_v13  ;;  %v1116_v21 = vadd.f32 0.112945676, %v1115_v11  ;;  %vm1167_vm8 = vweird.f32 %v1723_v42 }
 0x1e3   : > { %vm1166_vm9 = vweird.f32 %v2590_v4  ;;  %v1178_v5 = vmul.f32 %v2632_v29, %v2632_v29  ;;  %v2638_v0 = vadd.f32 %v1071_v58, %v869_v33  ;;  %v2640_v35 = vadd.f32 1e-05, %v745_v46 }
 0x1e4   : > { %v1163_v15 = vsub.f32 1.0, %v1162_v62  ;;  %v1106_v23 = vmul.f32 %v1105_v14, %v2575_v9  ;;  %v1117_v12 = vmul.f32 %v1116_v21, %v2575_v9  ;;  %vm1171_vm10 = vcmp.eq.f32.partialorder %v1170_v61, 8.507059e+37  ;;  %vm1168_vm11 = vmor %vm1166_vm9, %vm1167_vm8  ;;  %v917_v61 = vpop.xlane.xlu1 %916 }
 0x1e5   : > { %1726 = vrsqrt.f32 %v2628_v26  ;;  %v1173_v19 = vor.u32 1.1754944e-38, %v1172_v2  ;;  %v2647_v4 = vmin.f32 %v1178_v5, 16.0  ;;  %v2650_v11 = vmul.f32 0.70710677, %v2638_v0 }
 0x1e6   : > { %v1164_v41 = vmul.f32 %v1723_v42, %v1163_v15  ;;  %v1107_v48 = vadd.f32 0.18741608, %v1106_v23  ;;  %v1118_v1 = vadd.f32 0.4994258, %v1117_v12  ;;  %v2644_v6 = vpop.eup %1724  ;;  %1728 = vrsqrt.f32 %v2640_v35 }
 0x1e7   : > { %v827_v33 = vmul.f32 %v2644_v6, %v2615_v20  ;;  %v1180_v53 = vmul.f32 2.1237322e-06, %v2647_v4  ;;  %v1191_v62 = vmul.f32 3.8918573e-05, %v2647_v4  ;;  %v2670_v3 = vmul.f32 %v2542_v55, %v2542_v55 }
 0x1e8   : > { %v1165_v60 = vadd.f32 %v1723_v42, %v1164_v41  ;;  %v1119_v63 = vmul.f32 %v1118_v1, %v2575_v9  ;;  %v1108_v13 = vmul.f32 %v1107_v48, %v2575_v9  ;;  %v1298_v9 = vmul.f32 %v2650_v11, %v2650_v11  ;;  %v2685_v48 = vpop.xlane.xlu2 %684 }
 0x1e9   : > { %v1083_v15 = vmul.f32 0.5, %v2444_v59  ;;  %v1181_v23 = vadd.f32 0.00028619796, %v1180_v53  ;;  %v1192_v46 = vadd.f32 0.001143296, %v1191_v62  ;;  %v828_v41 = vmul.f32 %v2644_v6, %v827_v33 }
 0x1ea   : > { %v1169_v51 = vsel %vm1168_vm11, %v1723_v42, %v1165_v60  ;;  %v2652_v54 = vadd.f32 1.0, %v1119_v63  ;;  %v2665_v42 = vmul.f32 %v2525_v8, %v2525_v8  ;;  %v2674_v12 = vmin.f32 %v1298_v9, 16.0 }
 0x1eb   : > { %v1174_v43 = vsel %vm1171_vm10, %v1173_v19, %v1169_v51  ;;  %v2676_v2 = vpop.eup %1726  ;;  %v1109_v1 = vadd.f32 1.1283791, %v1108_v13  ;;  %v1182_v59 = vmul.f32 %v1181_v23, %v2647_v4  ;;  %v2689_v60 = vmul.f32 0.0078125, %v917_v61 }
 0x1ec   : > { %v1175_v21 = vmul.f32 %v1174_v43, %v1150_v7  ;;  %1730 = vrcp.f32 %v2652_v54  ;;  %v2681_v7 = vmul.f32 %v2520_v30, %v810_v47  ;;  %v1300_v5 = vmul.f32 2.1237322e-06, %v2674_v12  ;;  %v2691_v63 = vpop.eup %1728 }
 0x1ed   : > { %v1193_v47 = vmul.f32 %v1192_v46, %v2647_v4  ;;  %v1311_v19 = vmul.f32 3.8918573e-05, %v2674_v12  ;;  %v829_v51 = vmul.f32 0.5, %v828_v41  ;;  %vm1126_vm14 = vweird.f32 %v2652_v54 }
 0x1ee   : > { %v1580_v58 = vclamps-f32 %v1175_v21, 1.0  ;;  %v1130_v13 = vand.u32 2147483647, %v2652_v54  ;;  %v1183_v33 = vadd.f32 0.0036580483, %v1182_v59  ;;  %v999_v53 = vmul.f32 %v2676_v2, %v2628_v26 }
 0x1ef   : > { %v1301_v43 = vadd.f32 0.00028619796, %v1300_v5  ;;  %v1132_v21 = vand.u32 2147483648, %v2652_v54  ;;  %v1194_v61 = vadd.f32 0.014752088, %v1193_v47  ;;  %vm832_vm15 = vweird.f32 %v2615_v20 }
 0x1f0   : > { %v1419_v45 = vadd.f32 1.0, %v1580_v58  ;;  %v1312_v23 = vadd.f32 0.001143296, %v1311_v19  ;;  %v1184_v46 = vmul.f32 %v1183_v33, %v2647_v4  ;;  %vm833_vm0 = vweird.f32 %v2644_v6 }
 0x1f1   : > { %v1302_v41 = vmul.f32 %v1301_v43, %v2674_v12  ;;  %vm1004_vm1 = vweird.f32 %v2628_v26  ;;  %v830_v5 = vsub.f32 1.5, %v829_v51  ;;  %v797_v43 = vmul.f32 %v2691_v63, %v2640_v35  ;;  %vm2740_vm7 = vmor %vm832_vm15, %vm833_vm0 }
 0x1f2   : > { %v1731_v62 = vpop.eup %1730  ;;  %v1427_v9 = vmul.f32 %v1419_v45, %v1083_v15  ;;  %v1195_v15 = vmul.f32 %v1194_v61, %v2647_v4  ;;  %v1313_v59 = vmul.f32 %v1312_v23, %v2674_v12  ;;  %v1000_v45 = vmul.f32 %v2676_v2, %v999_v53 }
 0x1f3   : > { %v1122_v58 = vmul.f32 %v1731_v62, %v2652_v54  ;;  %v1185_v19 = vadd.f32 0.05243302, %v1184_v46  ;;  %v1303_v33 = vadd.f32 0.0036580483, %v1302_v41  ;;  %v1133_v14 = vor.u32 1.1754944e-38, %v1132_v21  ;;  %v913_v46 = vpop.xlane.xlu2 %912 }
 0x1f4   : > { %1435 = vst [vmem:[%s2709_s8 + $0x8] sm:$0xff] %v1427_v9  ;;  %v1196_v18 = vadd.f32 0.112945676, %v1195_v15  ;;  %v1314_v56 = vadd.f32 0.014752088, %v1313_v59  ;;  %v1001_v55 = vmul.f32 0.5, %v1000_v45  ;;  %vm1127_vm2 = vweird.f32 %v1731_v62 }
 0x1f5   : > { %v1123_v47 = vsub.f32 1.0, %v1122_v58  ;;  %v1186_v9 = vmul.f32 %v1185_v19, %v2647_v4  ;;  %v1304_v61 = vmul.f32 %v1303_v33, %v2674_v12  ;;  %v798_v58 = vmul.f32 %v2691_v63, %v797_v43  ;;  %vm1128_vm5 = vmor %vm1126_vm14, %vm1127_vm2 }
 0x1f6   : > { %v1197_v51 = vmul.f32 %v1196_v18, %v2647_v4  ;;  %v1315_v53 = vmul.f32 %v1314_v56, %v2674_v12  ;;  %v1002_v23 = vsub.f32 1.5, %v1001_v55  ;;  %v831_v59 = vmul.f32 %v2644_v6, %v830_v5 }
 0x1f7   : > { %v1124_v50 = vmul.f32 %v1731_v62, %v1123_v47  ;;  %v1305_v15 = vadd.f32 0.05243302, %v1304_v61  ;;  %vm1005_vm4 = vweird.f32 %v2676_v2  ;;  %v799_v55 = vmul.f32 0.5, %v798_v58 }
 0x1f8   : > { %v1198_v56 = vadd.f32 0.4994258, %v1197_v51  ;;  %v1316_v18 = vadd.f32 0.112945676, %v1315_v53  ;;  %v1110_v45 = vmul.f32 %v1109_v1, %v2553_v31  ;;  %vm1131_vm6 = vcmp.eq.f32.partialorder %v1130_v13, 8.507059e+37  ;;  %vm2753_vm8 = vmor %vm1004_vm1, %vm1005_vm4 }
 0x1f9   : > { %v1125_v41 = vadd.f32 %v1731_v62, %v1124_v50  ;;  %v1003_v50 = vmul.f32 %v2676_v2, %v1002_v23  ;;  %v1187_v47 = vadd.f32 0.18741608, %v1186_v9  ;;  %v2745_v19 = vmul.f32 0.0078125, %v2407_v24 }
 0x1fa   : > { %v1199_v33 = vmul.f32 %v1198_v56, %v2647_v4  ;;  %v1317_v43 = vmul.f32 %v1316_v18, %v2674_v12  ;;  %v835_v24 = vsel %vm2740_vm7, %v2644_v6, %v831_v59  ;;  %v1306_v26 = vmul.f32 %v1305_v15, %v2674_v12 }
 0x1fb   : > { %v1129_v37 = vsel %vm1128_vm5, %v1731_v62, %v1125_v41  ;;  %v1007_v1 = vsel %vm2753_vm8, %v2676_v2, %v1003_v50  ;;  %v800_v9 = vsub.f32 1.5, %v799_v55  ;;  %v1188_v51 = vmul.f32 %v1187_v47, %v2647_v4 }
 0x1fc   : > { %v1134_v54 = vsel %vm1131_vm6, %v1133_v14, %v1129_v37  ;;  %v815_v14 = vsel %vm2726_vm3, %v2520_v30, %v2681_v7  ;;  %v2767_v13 = vadd.f32 1.0, %v1199_v33  ;;  %v1318_v62 = vadd.f32 0.4994258, %v1317_v43 }
 0x1fd   : > { %v1135_v20 = vmul.f32 %v1134_v54, %v1110_v45  ;;  %v753_v30 = vsub.f32 %v2319_v27, %v2550_v10  ;;  %v942_v7 = vsub.f32 %v2689_v60, %v2497_v25  ;;  %v1082_v6 = vmul.f32 0.5, %v2546_v38  ;;  %v919_v38 = vpop.xlane.xlu2 %918 }
 0x1fe   : > { %v2777_v53 = vmul.f32 %v2392_v57, %v815_v14  ;;  %1732 = vrcp.f32 %v2767_v13  ;;  %v1052_v2 = vmul.f32 %v2378_v39, %v1007_v1  ;;  %v1319_v58 = vmul.f32 %v1318_v62, %v2674_v12 }
 0x1ff   : > { %v1579_v61 = vclamps-f32 %v1135_v20, 1.0  ;;  %v756_v4 = vsub.f32 %v2325_v32, %v2565_v22  ;;  %v853_v27 = vmul.f32 %v2392_v57, %v835_v24  ;;  %v1307_v10 = vadd.f32 0.18741608, %v1306_v26 }
 0x200   : > { %v801_v25 = vmul.f32 %v2691_v63, %v800_v9  ;;  %vm802_vm9 = vweird.f32 %v2640_v35  ;;  %vm803_vm10 = vweird.f32 %v2691_v63  ;;  %v1189_v41 = vadd.f32 1.1283791, %v1188_v51 }
 0x201   : > { %v1418_v23 = vadd.f32 1.0, %v1579_v61  ;;  %v2788_v21 = vadd.f32 1.0, %v1319_v58  ;;  %vm804_vm11 = vmor %vm802_vm9, %vm803_vm10  ;;  %v950_v15 = vmax.f32 %v942_v7, 0.0  ;;  %v2791_v59 = vmul.f32 0.5, %v2620_v34 }
 0x202   : > { %v3092_v32 = vsub.f32 %v2217_v49, %v2449_v17  ;;  %v805_v56 = vsel %vm804_vm11, %v2691_v63, %v801_v25  ;;  %v2798_v35 = vmul.f32 0.0078125, %v2685_v48  ;;  %v2802_v18 = vmul.f32 0.5, %v2638_v0 }
 0x203   : > { %v1426_v60 = vmul.f32 %v1418_v23, %v1082_v6  ;;  %1734 = vrcp.f32 %v2788_v21  ;;  %v924_v50 = vmul.f32 0.0078125, %v913_v46  ;;  %v927_v55 = vmul.f32 0.0078125, %v919_v38 }
 0x204   : > { %v1060_v22 = vmul.f32 %v1052_v2, %v3092_v32  ;;  %v1733_v45 = vpop.eup %1732  ;;  %v1308_v34 = vmul.f32 %v1307_v10, %v2674_v12  ;;  %v850_v37 = vmul.f32 %v2392_v57, %v805_v56  ;;  %v2807_v49 = vadd.f32 1e-05, %v950_v15 }
 0x205   : > { %1434 = vst [vmem:[%s2709_s8] sm:$0xff] %v1426_v60  ;;  %v733_v17 = vmul.f32 %v2798_v35, %v2798_v35  ;;  %v1190_v48 = vmul.f32 %v1189_v41, %v2632_v29  ;;  %v1202_v63 = vmul.f32 %v1733_v45, %v2767_v13  ;;  %v1210_v0 = vand.u32 2147483647, %v2767_v13 }
 0x206   : > { %v861_v47 = vmul.f32 %v853_v27, %v756_v4  ;;  %v1069_v46 = vadd.f32 %v2385_v44, %v1060_v22  ;;  %v858_v5 = vmul.f32 %v850_v37, %v753_v30  ;;  %1736 = vrsqrt.f32 %v2807_v49 }
 0x207   : > { %v741_v12 = vsub.f32 %v2745_v19, %v733_v17  ;;  %v1203_v54 = vsub.f32 1.0, %v1202_v63  ;;  %v1212_v33 = vand.u32 2147483648, %v2767_v13  ;;  %v940_v43 = vsub.f32 %v924_v50, %v2665_v42 }
 0x208   : > { %v943_v31 = vsub.f32 %v927_v55, %v2670_v3  ;;  %vm1206_vm12 = vweird.f32 %v2767_v13  ;;  %v1309_v29 = vadd.f32 1.1283791, %v1308_v34  ;;  %v867_v20 = vadd.f32 %v2417_v36, %v858_v5 }
 0x209   : > { %v749_v14 = vmax.f32 %v741_v12, 0.0  ;;  %v1735_v24 = vpop.eup %1734  ;;  %v1204_v1 = vmul.f32 %v1733_v45, %v1203_v54  ;;  %vm1207_vm13 = vweird.f32 %v1733_v45  ;;  %v948_v26 = vmax.f32 %v940_v43, 0.0 }
 0x20a   : > { %v951_v62 = vmax.f32 %v943_v31, 0.0  ;;  %vm2822_vm14 = vcmp.eq.f32.partialorder %v1210_v0, 8.507059e+37  ;;  %v1322_v9 = vmul.f32 %v1735_v24, %v2788_v21  ;;  %v2827_v42 = vadd.f32 %v1069_v46, %v867_v20  ;;  %vm1208_vm15 = vmor %vm1206_vm12, %vm1207_vm13 }
 0x20b   : > { %v2829_v3 = vadd.f32 1e-05, %v749_v14  ;;  %v1205_v61 = vadd.f32 %v1733_v45, %v1204_v1  ;;  %v1213_v51 = vor.u32 1.1754944e-38, %v1212_v33  ;;  %v2831_v30 = vadd.f32 1e-05, %v948_v26 }
 0x20c   : > { %v2833_v7 = vadd.f32 1e-05, %v951_v62  ;;  %v1737_v6 = vpop.eup %1736  ;;  %v1323_v2 = vsub.f32 1.0, %v1322_v9  ;;  %v1330_v23 = vand.u32 2147483647, %v2788_v21  ;;  %vm1327_vm0 = vweird.f32 %v1735_v24 }
 0x20d   : > { %v2839_v58 = vmul.f32 0.70710677, %v2827_v42  ;;  %1738 = vrsqrt.f32 %v2829_v3  ;;  %v1209_v4 = vsel %vm1208_vm15, %v1733_v45, %v1205_v61  ;;  %v1332_v27 = vand.u32 2147483648, %v2788_v21 }
 0x20e   : > { %v1029_v10 = vmul.f32 %v1737_v6, %v2807_v49  ;;  %v1214_v25 = vsel %vm2822_vm14, %v1213_v51, %v1209_v4  ;;  %v1324_v38 = vmul.f32 %v1735_v24, %v1323_v2  ;;  %1740 = vrsqrt.f32 %v2831_v30 }
 0x20f   : > { %v1218_v13 = vmul.f32 %v2839_v58, %v2839_v58  ;;  %v1215_v60 = vmul.f32 %v1214_v25, %v1190_v48  ;;  %v2850_v41 = vadd.f32 %v2417_v36, %v861_v47  ;;  %1742 = vrsqrt.f32 %v2833_v7 }
 0x210   : > { %v1030_v15 = vmul.f32 %v1737_v6, %v1029_v10  ;;  %v1310_v32 = vmul.f32 %v1309_v29, %v2650_v11  ;;  %v1325_v22 = vadd.f32 %v1735_v24, %v1324_v38  ;;  %vm1326_vm1 = vweird.f32 %v2788_v21 }
 0x211   : > { %v2855_v56 = vmin.f32 %v1218_v13, 16.0  ;;  %v1581_v50 = vclamps-f32 %v1215_v60, 1.0  ;;  %vm1328_vm2 = vmor %vm1326_vm1, %vm1327_vm0  ;;  %vm1331_vm3 = vcmp.eq.f32.partialorder %v1330_v23, 8.507059e+37  ;;  %v1333_v55 = vor.u32 1.1754944e-38, %v1332_v27 }
 0x212   : > { %v1031_v45 = vmul.f32 0.5, %v1030_v15  ;;  %v1329_v37 = vsel %vm1328_vm2, %v1735_v24, %v1325_v22  ;;  %vm1035_vm4 = vweird.f32 %v1737_v6  ;;  %vm1034_vm5 = vweird.f32 %v2807_v49 }
 0x213   : > { %v2858_v34 = vpop.eup %1738  ;;  %v1220_v17 = vmul.f32 2.1237322e-06, %v2855_v56  ;;  %v1231_v48 = vmul.f32 3.8918573e-05, %v2855_v56  ;;  %v1420_v11 = vadd.f32 1.0, %v1581_v50  ;;  %v1334_v63 = vsel %vm1331_vm3, %v1333_v55, %v1329_v37  ;;  %vm1036_vm6 = vmor %vm1034_vm5, %vm1035_vm4 }
 0x214   : > { %v1032_v0 = vsub.f32 1.5, %v1031_v45  ;;  %v837_v21 = vmul.f32 %v2858_v34, %v2829_v3  ;;  %v1741_v47 = vpop.eup %1740  ;;  %v1335_v46 = vmul.f32 %v1334_v63, %v1310_v32  ;;  %vm842_vm7 = vweird.f32 %v2829_v3 }
 0x215   : > { %v1221_v5 = vadd.f32 0.00028619796, %v1220_v17  ;;  %v1232_v12 = vadd.f32 0.001143296, %v1231_v48  ;;  %v1743_v54 = vpop.eup %1742  ;;  %v1428_v33 = vmul.f32 %v1420_v11, %v2791_v59  ;;  %v1009_v29 = vmul.f32 %v1741_v47, %v2831_v30 }
 0x216   : > { %v1033_v43 = vmul.f32 %v1737_v6, %v1032_v0  ;;  %v838_v31 = vmul.f32 %v2858_v34, %v837_v21  ;;  %v1584_v20 = vclamps-f32 %v1335_v46, 1.0  ;;  %v1039_v59 = vmul.f32 %v1743_v54, %v2833_v7  ;;  %v3099_v21 = vld [vmem:[#allocation14_spill] sm:$0xff] }
 0x217   : > { %v1222_v14 = vmul.f32 %v1221_v5, %v2855_v56  ;;  %v1233_v24 = vmul.f32 %v1232_v12, %v2855_v56  ;;  %1436 = vst [vmem:[%s2709_s8 + $0x10] sm:$0xff] %v1428_v33  ;;  %v1010_v26 = vmul.f32 %v1741_v47, %v1009_v29  ;;  %vm843_vm8 = vweird.f32 %v2858_v34  ;;  %v3101_v5 = vld [vmem:[#allocation13_spill] sm:$0xff] }
 0x218   : > { %v1037_v1 = vsel %vm1036_vm6, %v1737_v6, %v1033_v43  ;;  %v839_v49 = vmul.f32 0.5, %v838_v31  ;;  %v1423_v62 = vadd.f32 1.0, %v1584_v20  ;;  %v1040_v23 = vmul.f32 %v1743_v54, %v1039_v59  ;;  %vm2889_vm10 = vmor %vm842_vm7, %vm843_vm8 }
 0x219   : > { %v1223_v19 = vadd.f32 0.0036580483, %v1222_v14  ;;  %v1234_v9 = vadd.f32 0.014752088, %v1233_v24  ;;  %v1055_v61 = vmul.f32 %v2378_v39, %v1037_v1  ;;  %v1011_v2 = vmul.f32 0.5, %v1010_v26 }
 0x21a   : > { %v840_v51 = vsub.f32 1.5, %v839_v49  ;;  %v1431_v4 = vmul.f32 %v1423_v62, %v2802_v18  ;;  %v3095_v10 = vsub.f32 %v2240_v16, %v2470_v52  ;;  %vm1015_vm9 = vweird.f32 %v1741_v47 }
 0x21b   : > { %v1224_v27 = vmul.f32 %v1223_v19, %v2855_v56  ;;  %v1235_v6 = vmul.f32 %v1234_v9, %v2855_v56  ;;  %v1012_v13 = vsub.f32 1.5, %v1011_v2  ;;  %v1041_v60 = vmul.f32 0.5, %v1040_v23 }
 0x21c   : > { %v1063_v25 = vmul.f32 %v1055_v61, %v3095_v10  ;;  %v841_v38 = vmul.f32 %v2858_v34, %v840_v51  ;;  %1439 = vst [vmem:[%s2709_s8 + $0x28] sm:$0xff] %v1431_v4  ;;  %vm1014_vm11 = vweird.f32 %v2831_v30  ;;  %vm1045_vm12 = vweird.f32 %v1743_v54 }
 0x21d   : > { %v1225_v15 = vadd.f32 0.05243302, %v1224_v27  ;;  %v1236_v32 = vadd.f32 0.112945676, %v1235_v6  ;;  %v1013_v52 = vmul.f32 %v1741_v47, %v1012_v13  ;;  %v1042_v50 = vsub.f32 1.5, %v1041_v60  ;;  %vm1016_vm13 = vmor %vm1014_vm11, %vm1015_vm9 }
 0x21e   : > { %v1072_v22 = vadd.f32 %v2385_v44, %v1063_v25  ;;  %v845_v16 = vsel %vm2889_vm10, %v2858_v34, %v841_v38  ;;  %v754_v55 = vsub.f32 %v2262_v40, %v2409_v28  ;;  %vm1044_vm14 = vweird.f32 %v2833_v7  ;;  %v3098_v34 = vld [vmem:[#allocation11_spill] sm:$0xff] }
 0x21f   : > { %v1237_v45 = vmul.f32 %v1236_v32, %v2855_v56  ;;  %v1226_v37 = vmul.f32 %v1225_v15, %v2855_v56  ;;  %v1017_v30 = vsel %vm1016_vm13, %v1741_v47, %v1013_v52  ;;  %v1043_v17 = vmul.f32 %v1743_v54, %v1042_v50  ;;  %vm1046_vm15 = vmor %vm1044_vm14, %vm1045_vm12  ;;  %v3100_v47 = vld [vmem:[#allocation12_spill] sm:$0xff] }
 0x220   : > { %v2901_v3 = vadd.f32 %v1072_v22, %v2850_v41  ;;  %v956_v48 = vsub.f32 %v3098_v34, %v2525_v8  ;;  %v854_v63 = vmul.f32 %v2392_v57, %v845_v16  ;;  %v859_v40 = vmul.f32 %v2777_v53, %v754_v55 }
 0x221   : > { %v1238_v11 = vadd.f32 0.4994258, %v1237_v45  ;;  %v1053_v41 = vmul.f32 %v2378_v39, %v1017_v30  ;;  %v1047_v0 = vsel %vm1046_vm15, %v1743_v54, %v1043_v17  ;;  %v959_v46 = vsub.f32 %v3100_v47, %v3099_v21 }
 0x222   : > { %v2911_v28 = vmul.f32 0.70710677, %v2901_v3  ;;  %v757_v8 = vsub.f32 %v3101_v5, %v2798_v35  ;;  %v1056_v12 = vmul.f32 %v2378_v39, %v1047_v0  ;;  %v1227_v57 = vadd.f32 0.18741608, %v1226_v37 }
 0x223   : > { %v1239_v7 = vmul.f32 %v1238_v11, %v2855_v56  ;;  %v1061_v33 = vmul.f32 %v1053_v41, %v956_v48  ;;  %v868_v54 = vadd.f32 %v2417_v36, %v859_v40 }
 0x224   : > { %v1338_v53 = vmul.f32 %v2911_v28, %v2911_v28  ;;  %v862_v31 = vmul.f32 %v854_v63, %v757_v8  ;;  %v1064_v29 = vmul.f32 %v1056_v12, %v959_v46  ;;  %v1228_v24 = vmul.f32 %v1227_v57, %v2855_v56 }
 0x225   : > { %v1240_v43 = vadd.f32 1.0, %v1239_v7  ;;  %v1070_v14 = vadd.f32 %v2385_v44, %v1061_v33 }
 0x226   : > { %v2923_v20 = vmin.f32 %v1338_v53, 16.0  ;;  %v871_v49 = vadd.f32 %v2417_v36, %v862_v31  ;;  %v1073_v26 = vadd.f32 %v2385_v44, %v1064_v29  ;;  %v1229_v61 = vadd.f32 1.1283791, %v1228_v24 }
 0x227   : > { %1744 = vrcp.f32 %v1240_v43  ;;  %v2929_v1 = vadd.f32 %v1070_v14, %v868_v54  ;;  %v1250_v13 = vand.u32 2147483647, %v1240_v43  ;;  %v1252_v15 = vand.u32 2147483648, %v1240_v43 }
 0x228   : > { %v1340_v35 = vmul.f32 2.1237322e-06, %v2923_v20  ;;  %v1351_v39 = vmul.f32 3.8918573e-05, %v2923_v20  ;;  %v2936_v9 = vadd.f32 %v1073_v26, %v871_v49  ;;  %v1230_v25 = vmul.f32 %v1229_v61, %v2839_v58 }
 0x229   : > { %v2934_v19 = vmul.f32 0.70710677, %v2929_v1  ;;  %vm1246_vm1 = vweird.f32 %v1240_v43  ;;  %vm1251_vm2 = vcmp.eq.f32.partialorder %v1250_v13, 8.507059e+37  ;;  %v1253_v34 = vor.u32 1.1754944e-38, %v1252_v15 }
 0x22a   : > { %v1341_v59 = vadd.f32 0.00028619796, %v1340_v35  ;;  %v1352_v62 = vadd.f32 0.001143296, %v1351_v39  ;;  %v2943_v36 = vmul.f32 0.70710677, %v2936_v9 }
 0x22b   : > { %v1258_v23 = vmul.f32 %v2934_v19, %v2934_v19  ;;  %v1085_v24 = vmul.f32 0.5, %v2827_v42 }
 0x22c   : > { %v1342_v56 = vmul.f32 %v1341_v59, %v2923_v20  ;;  %v1353_v51 = vmul.f32 %v1352_v62, %v2923_v20  ;;  %v1378_v10 = vmul.f32 %v2943_v36, %v2943_v36 }
 0x22d   : > { %v1745_v2 = vpop.eup %1744  ;;  %v2945_v6 = vmin.f32 %v1258_v23, 16.0 }
 0x22e   : > { %v1242_v44 = vmul.f32 %v1745_v2, %v1240_v43  ;;  %v1343_v4 = vadd.f32 0.0036580483, %v1342_v56  ;;  %v1354_v27 = vadd.f32 0.014752088, %v1353_v51  ;;  %v2953_v18 = vmin.f32 %v1378_v10, 16.0 }
 0x22f   : > { %v1260_v32 = vmul.f32 2.1237322e-06, %v2945_v6  ;;  %v1271_v22 = vmul.f32 3.8918573e-05, %v2945_v6  ;;  %vm1247_vm0 = vweird.f32 %v1745_v2 }
 0x230   : > { %v1243_v38 = vsub.f32 1.0, %v1242_v44  ;;  %v1355_v60 = vmul.f32 %v1354_v27, %v2923_v20  ;;  %v1344_v52 = vmul.f32 %v1343_v4, %v2923_v20  ;;  %v1380_v58 = vmul.f32 2.1237322e-06, %v2953_v18  ;;  %vm1248_vm3 = vmor %vm1246_vm1, %vm1247_vm0 }
 0x231   : > { %v1261_v55 = vadd.f32 0.00028619796, %v1260_v32  ;;  %v1272_v45 = vadd.f32 0.001143296, %v1271_v22  ;;  %v1391_v17 = vmul.f32 3.8918573e-05, %v2953_v18 }
 0x232   : > { %v1244_v16 = vmul.f32 %v1745_v2, %v1243_v38  ;;  %v1356_v50 = vadd.f32 0.112945676, %v1355_v60  ;;  %v1381_v63 = vadd.f32 0.00028619796, %v1380_v58  ;;  %v1345_v41 = vadd.f32 0.05243302, %v1344_v52 }
 0x233   : > { %v1262_v48 = vmul.f32 %v1261_v55, %v2945_v6  ;;  %v1273_v11 = vmul.f32 %v1272_v45, %v2945_v6  ;;  %v1392_v21 = vadd.f32 0.001143296, %v1391_v17 }
 0x234   : > { %v1245_v37 = vadd.f32 %v1745_v2, %v1244_v16  ;;  %v1357_v30 = vmul.f32 %v1356_v50, %v2923_v20  ;;  %v1382_v12 = vmul.f32 %v1381_v63, %v2953_v18  ;;  %v1346_v43 = vmul.f32 %v1345_v41, %v2923_v20 }
 0x235   : > { %v1263_v46 = vadd.f32 0.0036580483, %v1262_v48  ;;  %v1274_v7 = vadd.f32 0.014752088, %v1273_v11  ;;  %v1393_v57 = vmul.f32 %v1392_v21, %v2953_v18 }
 0x236   : > { %v1249_v40 = vsel %vm1248_vm3, %v1745_v2, %v1245_v37  ;;  %v1358_v0 = vadd.f32 0.4994258, %v1357_v30  ;;  %v1383_v39 = vadd.f32 0.0036580483, %v1382_v12  ;;  %v1347_v59 = vadd.f32 0.18741608, %v1346_v43 }
 0x237   : > { %v1254_v47 = vsel %vm1251_vm2, %v1253_v34, %v1249_v40  ;;  %v1275_v53 = vmul.f32 %v1274_v7, %v2945_v6  ;;  %v1394_v29 = vadd.f32 0.014752088, %v1393_v57  ;;  %v1264_v54 = vmul.f32 %v1263_v46, %v2945_v6 }
 0x238   : > { %v1255_v5 = vmul.f32 %v1254_v47, %v1230_v25  ;;  %v1359_v8 = vmul.f32 %v1358_v0, %v2923_v20  ;;  %v1384_v51 = vmul.f32 %v1383_v39, %v2953_v18  ;;  %v1348_v42 = vmul.f32 %v1347_v59, %v2923_v20 }
 0x239   : > { %v1276_v14 = vadd.f32 0.112945676, %v1275_v53  ;;  %v1395_v62 = vmul.f32 %v1394_v29, %v2953_v18  ;;  %v1265_v61 = vadd.f32 0.05243302, %v1264_v54 }
 0x23a   : > { %v1582_v33 = vclamps-f32 %v1255_v5, 1.0  ;;  %v1360_v31 = vadd.f32 1.0, %v1359_v8  ;;  %v1385_v38 = vadd.f32 0.05243302, %v1384_v51  ;;  %v1349_v15 = vadd.f32 1.1283791, %v1348_v42 }
 0x23b   : > { %v1277_v49 = vmul.f32 %v1276_v14, %v2945_v6  ;;  %v1396_v2 = vadd.f32 0.112945676, %v1395_v62  ;;  %v1266_v10 = vmul.f32 %v1265_v61, %v2945_v6  ;;  %v1086_v62 = vmul.f32 0.5, %v2929_v1 }
 0x23c   : > { %v1421_v35 = vadd.f32 1.0, %v1582_v33  ;;  %1746 = vrcp.f32 %v1360_v31  ;;  %v1372_v32 = vand.u32 2147483648, %v1360_v31  ;;  %v1370_v52 = vand.u32 2147483647, %v1360_v31 }
 0x23d   : > { %v1278_v56 = vadd.f32 0.4994258, %v1277_v49  ;;  %v1397_v4 = vmul.f32 %v1396_v2, %v2953_v18  ;;  %v1267_v50 = vadd.f32 0.18741608, %v1266_v10  ;;  %v1386_v20 = vmul.f32 %v1385_v38, %v2953_v18 }
 0x23e   : > { %v1429_v26 = vmul.f32 %v1421_v35, %v1085_v24  ;;  %vm1366_vm5 = vweird.f32 %v1360_v31  ;;  %v1373_v58 = vor.u32 1.1754944e-38, %v1372_v32  ;;  %v1350_v30 = vmul.f32 %v1349_v15, %v2911_v28 }
 0x23f   : > { %v1279_v23 = vmul.f32 %v1278_v56, %v2945_v6  ;;  %v1398_v13 = vadd.f32 0.4994258, %v1397_v4  ;;  %vm1371_vm7 = vcmp.eq.f32.partialorder %v1370_v52, 8.507059e+37  ;;  %v1268_v34 = vmul.f32 %v1267_v50, %v2945_v6 }
 0x240   : > { %1437 = vst [vmem:[%s2709_s8 + $0x18] sm:$0xff] %v1429_v26  ;;  %v1387_v63 = vadd.f32 0.18741608, %v1386_v20  ;;  %v1088_v28 = vmul.f32 0.5, %v2901_v3 }
 0x241   : > { %v1280_v25 = vadd.f32 1.0, %v1279_v23  ;;  %v1399_v22 = vmul.f32 %v1398_v13, %v2953_v18  ;;  %v1269_v21 = vadd.f32 1.1283791, %v1268_v34 }
 0x242   : > { %v1747_v44 = vpop.eup %1746  ;;  %v1388_v8 = vmul.f32 %v1387_v63, %v2953_v18 }
 0x243   : > { %v1362_v27 = vmul.f32 %v1747_v44, %v1360_v31  ;;  %1748 = vrcp.f32 %v1280_v25  ;;  %vm1367_vm4 = vweird.f32 %v1747_v44  ;;  %v1400_v55 = vadd.f32 1.0, %v1399_v22 }
 0x244   : > { %vm1368_vm6 = vmor %vm1366_vm5, %vm1367_vm4  ;;  %v1292_v47 = vand.u32 2147483648, %v1280_v25  ;;  %v1290_v5 = vand.u32 2147483647, %v1280_v25  ;;  %vm1286_vm9 = vweird.f32 %v1280_v25  ;;  %v1270_v33 = vmul.f32 %v1269_v21, %v2934_v19 }
 0x245   : > { %v1363_v60 = vsub.f32 1.0, %v1362_v27  ;;  %1750 = vrcp.f32 %v1400_v55  ;;  %v1389_v54 = vadd.f32 1.1283791, %v1388_v8  ;;  %v1412_v14 = vand.u32 2147483648, %v1400_v55 }
 0x246   : > { %v1293_v43 = vor.u32 1.1754944e-38, %v1292_v47  ;;  %vm1291_vm11 = vcmp.eq.f32.partialorder %v1290_v5, 8.507059e+37  ;;  %v1410_v18 = vand.u32 2147483647, %v1400_v55  ;;  %vm1406_vm13 = vweird.f32 %v1400_v55 }
 0x247   : > { %v1364_v16 = vmul.f32 %v1747_v44, %v1363_v60  ;;  %v1413_v19 = vor.u32 1.1754944e-38, %v1412_v14  ;;  %v1390_v26 = vmul.f32 %v1389_v54, %v2943_v36 }
 0x248   : > { %vm1411_vm15 = vcmp.eq.f32.partialorder %v1410_v18, 8.507059e+37 }
 0x249   : > { %v1365_v45 = vadd.f32 %v1747_v44, %v1364_v16  ;;  %v1749_v37 = vpop.eup %1748 }
 0x24a   : > { %v1282_v11 = vmul.f32 %v1749_v37, %v1280_v25  ;;  %vm1287_vm8 = vweird.f32 %v1749_v37 }
 0x24b   : > { %v1369_v17 = vsel %vm1368_vm6, %v1747_v44, %v1365_v45  ;;  %v1751_v46 = vpop.eup %1750  ;;  %vm1288_vm10 = vmor %vm1286_vm9, %vm1287_vm8  ;;  %v1089_v44 = vmul.f32 0.5, %v2936_v9 }
 0x24c   : > { %v1374_v48 = vsel %vm1371_vm7, %v1373_v58, %v1369_v17  ;;  %v1283_v41 = vsub.f32 1.0, %v1282_v11  ;;  %v1402_v57 = vmul.f32 %v1751_v46, %v1400_v55  ;;  %vm1407_vm12 = vweird.f32 %v1751_v46 }
 0x24d   : > { %v1375_v40 = vmul.f32 %v1374_v48, %v1350_v30  ;;  %vm1408_vm14 = vmor %vm1406_vm13, %vm1407_vm12 }
 0x24e   : > { %v1284_v7 = vmul.f32 %v1749_v37, %v1283_v41  ;;  %v1403_v31 = vsub.f32 1.0, %v1402_v57 }
 0x24f   : > { %v1585_v0 = vclamps-f32 %v1375_v40, 1.0 }
 0x250   : > { %v1285_v6 = vadd.f32 %v1749_v37, %v1284_v7  ;;  %v1404_v35 = vmul.f32 %v1751_v46, %v1403_v31 }
 0x251   : > { %v1424_v12 = vadd.f32 1.0, %v1585_v0 }
 0x252   : > { %v1289_v29 = vsel %vm1288_vm10, %v1749_v37, %v1285_v6  ;;  %v1405_v39 = vadd.f32 %v1751_v46, %v1404_v35 }
 0x253   : > { %v1432_v53 = vmul.f32 %v1424_v12, %v1088_v28  ;;  %v1294_v24 = vsel %vm1291_vm11, %v1293_v43, %v1289_v29 }
 0x254   : > { %v1295_v3 = vmul.f32 %v1294_v24, %v1270_v33  ;;  %v1409_v59 = vsel %vm1408_vm14, %v1751_v46, %v1405_v39 }
 0x255   : > { %1440 = vst [vmem:[%s2709_s8 + $0x30] sm:$0xff] %v1432_v53  ;;  %v1414_v56 = vsel %vm1411_vm15, %v1413_v19, %v1409_v59 }
 0x256   : > { %v1583_v49 = vclamps-f32 %v1295_v3, 1.0  ;;  %v1415_v51 = vmul.f32 %v1414_v56, %v1390_v26 }
 0x258   : > { %v1422_v61 = vadd.f32 1.0, %v1583_v49  ;;  %v1586_v23 = vclamps-f32 %v1415_v51, 1.0 }
 0x25a   : > { %v1430_v2 = vmul.f32 %v1422_v61, %v1086_v62  ;;  %v1425_v42 = vadd.f32 1.0, %v1586_v23  ;;  %1449 = sbr.rel (!%p1999_p11) target bundleno = 638 (0x27e), region = 52 }
 0x25c   : > { %1438 = vst [vmem:[%s2709_s8 + $0x20] sm:$0xff] %v1430_v2  ;;  %v1433_v4 = vmul.f32 %v1425_v42, %v1089_v44 }
 0x25e   : > { %1441 = vst [vmem:[%s2709_s8 + $0x38] sm:$0xff] %v1433_v4 }
 0x25f   : > { %s3111_s17 = smov (!%p1452_p6, %s1451_s17), 8 }
 0x260   : > { %s1589_s25 = sshll.u32 %s3111_s17, 3 }
 0x261   : > { %s1455_s13 = ssub.s32 64, %s1589_s25 }
 0x262   : > { %s1456_s23 = sshll.u32 %s1455_s13, 4 }
 0x263   : > { %1457 = vsyncadd %s1443_s10, %s1456_s23  ;;  %p2998_p5 = scmp.ne.s32.totalorder %s1589_s25, 0  ;;  %s1599_s30 = sshll.u32 %s1968_s22, 6 }
 0x264   : > { %s1460_s28 = scalar_lea.hbm %s3056_s5, %s1599_s30  ;;  %s1462_s16 = sshll.u32 %s2709_s8, 4  ;;  %s3007_s16 = int_to_ptr.vmem [resolvable:$true] %s1462_s16 }
 0x265   : > { %s1464_s15 = sshll.u32 %s1460_s28, 4  ;;  %s1593_s14 = sshll.u32 %s3111_s17, 7  ;;  %s3009_s15 = int_to_ptr.hbm [resolvable:$true] %s1464_s15 }
 0x266   : > { %s1821_s12 = sshra.s32 %s3007_s16, 4  ;;  %s1823_s11 = sshrl.u32 %s1593_s14, 4  ;;  %s1822_s12 = int_to_ptr.vmem [resolvable:$true] %s1821_s12 }
 0x267   : > { %s1828_s26 = scalar_lea.vmem %s1822_s12, %s1823_s11  ;;  %s1914_s22 = smov [#allocation7]  }
 0x268   : > { %p1829_p11 = scmp.ne.s32.totalorder %s1822_s12, %s1828_s26  ;;  %s1832_s25 = scalar_lea.vmem %s1914_s22, 128 }
 0x269   : > { %p1834_p1 = scmp.lt.s32.totalorder %s1832_s25, %s1828_s26 }
 0x26a   : > { %p1830_p9 = pnand %p1829_p11, %p2998_p5 }
 0x26c   : > { %p1831_p10 = pneg %p1830_p9 }
 0x26e   : > { %p1836_p0 = pnand %p1834_p1, %p1831_p10 }
 0x270   : > { %1839 = shalt.err (!%p1836_p0)
}
 0x271   : > { %s1840_s8 = sshra.s32 %s3009_s15, 4  ;;  %s1851_s7 = scalar_lea.hbm %s3056_s5, 200  ;;  %s1841_s8 = int_to_ptr.hbm [resolvable:$true] %s1840_s8 }
 0x272   : > { %s1847_s13 = scalar_lea.hbm %s1841_s8, %s1823_s11  ;;  %p1852_p8 = scmp.lt.s32.totalorder %s1841_s8, %s3056_s5 }
 0x273   : > { %p1848_p2 = scmp.ne.s32.totalorder %s1841_s8, %s1847_s13  ;;  %p1853_p4 = scmp.lt.s32.totalorder %s1851_s7, %s1847_s13 }
 0x275   : > { %p1849_p3 = pnand %p1848_p2, %p2998_p5  ;;  %p1854_p12 = por %p1853_p4, %p1852_p8 }
 0x277   : > { %p1850_p7 = pneg %p1849_p3 }
 0x279   : > { %p1855_p13 = pnand %p1854_p12, %p1850_p7 }
 0x27b   : > { %1858 = shalt.err (!%p1855_p13)
}
 0x27c   : > { %s1915_s12 = smov 128   ;;  %s1916_s11 = smov 8  }
 0x27d   : > { %1470 = dma.vmem_to_hbm [thread:$0]  (%p2998_p5), %s3007_s16, %s1593_s14, %s3009_s15, %s1443_s10, %s1915_s12, %s1915_s12, %s1916_s11  }
 0x27e PF: > { %p1648_p6 = scmp.ge.s32.totalorder %s1902_s21, 2  ;;  %s1479_s26 = sand.u32 1, %s1890_s18  }
 0x27f   : > { %p3103_p11 = scmp.ne.s32.totalorder %s3067_s6, 0  ;;  %s1480_s22 = scalar_lea.sflag [#allocation4], %s1479_s26 }
 0x281   : > { %p1643_p9 = pnand %p1648_p6, %p3103_p11 }
 0x283   : > { %p1644_p10 = pneg %p1643_p9 }
 0x285   : > { %1885 = dma.done.wait (%p1644_p10), %s1480_s22, 1024  }
 0x286   : > { %1887 = vsyncadd (%p1644_p10), %s1480_s22, 4294966272  ;;  %p19_p1 = scmp.ge.s32.totalorder %s1972_s24, 6   ;;  %s3104_s18 = smov %s1894_s19 }
 0x287   : > { %s3105_s19 = smov %s1898_s20  ;;  %s3106_s20 = smov %s1984_s27 }
 0x288   : > { %s3107_s21 = smov %s1972_s24  ;;  %21 = sbr.rel (!%p19_p1) target bundleno = 8 (0x8), region = 92 }
 0x28d   :  { %1486 = vsyncpa [#allocation3], 1 }
 0x28e   :  { %1488 = vsyncpa [#allocation3 + $0x1], 1 }
 0x28f   :  { %1489 = vsyncpa [#allocation6], 1 }
 0x290   :  { %1490 = vsyncpa [#allocation4], 1 }
 0x291   :  { %1492 = vsyncpa [#allocation4 + $0x1], 1 }

</bundles_post_ra>
